<compile_context>
chip_gen: v6e
topology: v6e:2x2x1
jax: 0.10.0
libtpu: 0.0.40
codegen_flags: <defaults>
</compile_context>

<pallas_src>
import functools
import math

import jax
import jax.numpy as jnp
import numpy as np
from jax.experimental import pallas as pl
from jax.experimental.pallas import tpu as pltpu


# ----------------------------------------------------------------------------
# shared math (used verbatim by the Pallas kernel and the pure-JAX reference)
# ----------------------------------------------------------------------------
def _layernorm(x, gamma, beta, eps=1e-5):
    x = x.astype(jnp.float32)
    mu = jnp.mean(x, axis=-1, keepdims=True)
    var = jnp.mean(jnp.square(x - mu), axis=-1, keepdims=True)
    return (x - mu) * jax.lax.rsqrt(var + eps) * gamma + beta


def _clip_layer(x, g1, b1, win, bin_, wout, bout, g2, b2, w1, bb1, w2, bb2,
                *, n_head, attn_buf=None):
    """One CLIP transformer layer on a (Bt, S, D) f32 activation block.

    If `attn_buf` (a (Bt*S, D) bf16 VMEM ref) is given, head outputs are
    written into it so the output projection is a single full-depth matmul;
    otherwise (pure-JAX reference path) the heads are concatenated.  Both
    paths arrange the exact same bf16 values identically.
    """
    Bt, S, D = x.shape
    M = Bt * S
    H = n_head
    Dh = D // H
    scale = 1.0 / math.sqrt(Dh)

    xf = x.reshape(M, D).astype(jnp.float32)

    # --- causal multi-head self-attention ----------------------------------
    h = _layernorm(xf, g1, b1)
    qkv = jnp.dot(h.astype(jnp.bfloat16), win,
                  preferred_element_type=jnp.float32) + bin_          # (M, 3D)
    qkv = qkv.astype(jnp.bfloat16)        # single cast; halves live footprint

    row = jax.lax.broadcasted_iota(jnp.int32, (S, S), 0)
    col = jax.lax.broadcasted_iota(jnp.int32, (S, S), 1)
    causal = (col <= row)[None, :, :]                                 # (1,S,S)

    head_outs = []
    for hh in range(H):
        qh = qkv[:, hh * Dh:(hh + 1) * Dh].reshape(Bt, S, Dh)
        kh = qkv[:, D + hh * Dh:D + (hh + 1) * Dh].reshape(Bt, S, Dh)
        vh = qkv[:, 2 * D + hh * Dh:2 * D + (hh + 1) * Dh].reshape(Bt, S, Dh)

        s = jnp.einsum("bqd,bkd->bqk", qh, kh,
                       preferred_element_type=jnp.float32) * scale    # (Bt,S,S)
        s = jnp.where(causal, s, -1e30)
        s = s - jnp.max(s, axis=-1, keepdims=True)
        p = jnp.exp(s)
        p = p / jnp.sum(p, axis=-1, keepdims=True)        # exact divide

        oh = jnp.einsum("bqk,bkd->bqd", p.astype(jnp.bfloat16), vh,
                        preferred_element_type=jnp.float32)           # (Bt,S,Dh)
        oh = oh.astype(jnp.bfloat16).reshape(M, Dh)
        if attn_buf is None:
            head_outs.append(oh)
        else:
            attn_buf[:, hh * Dh:(hh + 1) * Dh] = oh

    if attn_buf is None:
        concat = jnp.concatenate(head_outs, axis=-1)                  # (M, D)
    else:
        concat = attn_buf[...]

    # single full-depth output projection (K = D, fills the MXU)
    x2 = jnp.dot(concat, wout, preferred_element_type=jnp.float32) + bout + xf

    # --- MLP with QuickGELU --------------------------------------------------
    h2 = _layernorm(x2, g2, b2)
    ff = jnp.dot(h2.astype(jnp.bfloat16), w1,
                 preferred_element_type=jnp.float32) + bb1
    ff = ff * jax.nn.sigmoid(1.702 * ff)
    y = jnp.dot(ff.astype(jnp.bfloat16), w2,
                preferred_element_type=jnp.float32) + bb2 + x2
    return y.reshape(Bt, S, D)


# ----------------------------------------------------------------------------
# fused transformer-stack kernel
#   grid = (batch_blocks, n_layers); the (Bt, S, D) activation lives in o_ref
#   across the layer axis (accumulator pattern, layer axis is "arbitrary").
# ----------------------------------------------------------------------------
def clip_stack_kernel(
    x_ref,                                    # (Bt, S, D)  f32 embedded tokens
    g1_ref, b1_ref,                           # (1, 1, D)   f32  layernorm_1
    win_ref, bin_ref,                         # (1, D, 3D) bf16 / (1, 1, 3D) f32
    wout_ref, bout_ref,                       # (1, D, D)  bf16 / (1, 1, D)  f32
    g2_ref, b2_ref,                           # (1, 1, D)   f32  layernorm_2
    w1_ref, bb1_ref,                          # (1, D, 4D) bf16 / (1, 1, 4D) f32
    w2_ref, bb2_ref,                          # (1, 4D, D) bf16 / (1, 1, D)  f32
    gf_ref, bf_ref,                           # (1, D)      f32  final layernorm
    o_ref,                                    # (Bt, S, D)  f32  activation carry
    attn_buf,                                 # (Bt*S, D)  bf16  scratch
    *, n_head: int, n_layers: int,
):
    layer = pl.program_id(1)

    # Load the embedded tokens into the carry at the first layer step.
    @pl.when(layer == 0)
    def _():
        o_ref[...] = x_ref[...]

    y = _clip_layer(
        o_ref[...],
        g1_ref[0], b1_ref[0], win_ref[0], bin_ref[0],
        wout_ref[0], bout_ref[0], g2_ref[0], b2_ref[0],
        w1_ref[0], bb1_ref[0], w2_ref[0], bb2_ref[0],
        n_head=n_head, attn_buf=attn_buf)

    is_last = layer == n_layers - 1

    @pl.when(jnp.logical_not(is_last))
    def _():
        o_ref[...] = y.astype(o_ref.dtype)

    # Fuse the final LayerNorm into the last layer step.
    @pl.when(is_last)
    def _():
        o_ref[...] = _layernorm(y, gf_ref[...], bf_ref[...]).astype(o_ref.dtype)


# ----------------------------------------------------------------------------
# wrapper: block sizing, VMEM budgeting, padding
# ----------------------------------------------------------------------------
_LAYER_PARAM_NAMES = ("g1", "b1", "win", "bin", "wout", "bout",
                      "g2", "b2", "w1", "bb1", "w2", "bb2")


def _round_up(x, m):
    return (x + m - 1) // m * m


def _vmem_capacity_bytes():
    try:
        cap = int(pltpu.get_tpu_info().vmem_capacity_bytes)
    except Exception:
        cap = 64 << 20          # conservative fallback (v7x per-TC VMEM)
    return max(cap, 32 << 20)


def _vmem_bytes_estimate(Bt, S, D, H):
    M = Bt * S
    weights = 2 * (12 * D * D * 2 + 13 * D * 4)   # double-buffered bf16 weights
    carry = 3 * Bt * S * D * 4                    # x_ref (2 bufs) + o_ref carry
    inter = (M * 3 * D * (4 + 2)                  # qkv f32 result + bf16 copy
             + M * 4 * D * (4 + 2)                # ff f32 + bf16 copy
             + 4 * Bt * S * S * 4                 # live attention score tiles
             + M * D * 2                          # head-output scratch (bf16)
             + 6 * M * D * 4)                     # LN / residual / y working f32
    return weights + carry + inter


def _pick_block_b(B, S, D, H, vmem_cap):
    """Sequences per grid step: enough rows to hide the ~12*D^2 bf16 weight DMA
    behind MXU compute (generation-dependent), bounded by the VMEM capacity."""
    target_rows = 1024 if vmem_cap >= (96 << 20) else 512
    bt = max(1, min(B, max(1, target_rows // max(S, 1))))
    budget = int(0.8 * vmem_cap)
    while bt > 1 and _vmem_bytes_estimate(bt, S, D, H) > budget:
        bt -= 1
    return bt


def _vmem_limit_bytes(Bt, S, D, H, vmem_cap):
    est = _vmem_bytes_estimate(Bt, S, D, H) + (4 << 20)
    return int(min(int(0.85 * vmem_cap), max(32 << 20, int(1.25 * est))))


def clip_encoder(x, params, n_head):
    """x: (B, S, D) f32 embedded tokens -> (B, S, D) f32 final hidden states."""
    B, S, D = x.shape
    L = params["win"].shape[0]
    H = n_head

    vmem_cap = _vmem_capacity_bytes()
    S_pad = _round_up(S, 8)                       # sublane-align M = Bt*S
    Bt = _pick_block_b(B, S_pad, D, H, vmem_cap)
    nb = -(-B // Bt)                              # pad B; never fall back to bt=1
    B_pad = nb * Bt

    if (B_pad, S_pad) != (B, S):
        x = jnp.pad(x, ((0, B_pad - B), (0, S_pad - S), (0, 0)))

    seq_spec = pl.BlockSpec((Bt, S_pad, D), lambda b, l: (b, 0, 0))

    def layer_spec(arr):
        nd = arr.ndim
        return pl.BlockSpec((1,) + arr.shape[1:],
                            lambda b, l, _nd=nd: (l,) + (0,) * (_nd - 1))

    def const_spec(arr):
        nd = arr.ndim
        return pl.BlockSpec(arr.shape, lambda b, l, _nd=nd: (0,) * _nd)

    layer_args = [params[n] for n in _LAYER_PARAM_NAMES]
    in_specs = ([seq_spec]
                + [layer_spec(a) for a in layer_args]
                + [const_spec(params["ln_f_gamma"]),
                   const_spec(params["ln_f_beta"])])

    out = pl.pallas_call(
        functools.partial(clip_stack_kernel, n_head=n_head, n_layers=L),
        out_shape=jax.ShapeDtypeStruct((B_pad, S_pad, D), jnp.float32),
        grid=(nb, L),
        in_specs=in_specs,
        out_specs=seq_spec,
        scratch_shapes=[pltpu.VMEM((Bt * S_pad, D), jnp.bfloat16)],
        compiler_params=pltpu.CompilerParams(
            dimension_semantics=("parallel", "arbitrary"),
            vmem_limit_bytes=_vmem_limit_bytes(Bt, S_pad, D, H, vmem_cap)),
    )(x, *layer_args, params["ln_f_gamma"], params["ln_f_beta"])

    return out[:B, :S]


def clip_forward(tokens, params, n_head):
    # TODO(synk): the nn.Embedding token gather stays in plain JAX (XLA gather);
    # the full transformer stack + final LayerNorm runs inside one Pallas call.
    x = params["token_embedding"][tokens] + params["position_embedding"][None, :, :]
    return clip_encoder(x.astype(jnp.float32), params, n_head)


# ----------------------------------------------------------------------------
# pure-JAX reference (identical math via _clip_layer)
# ----------------------------------------------------------------------------
def clip_forward_ref(tokens, params, n_head):
    x = params["token_embedding"][tokens] + params["position_embedding"][None, :, :]
    x = x.astype(jnp.float32)
    L = params["win"].shape[0]
    for li in range(L):
        x = _clip_layer(
            x,
            params["g1"][li], params["b1"][li], params["win"][li],
            params["bin"][li], params["wout"][li], params["bout"][li],
            params["g2"][li], params["b2"][li], params["w1"][li],
            params["bb1"][li], params["w2"][li], params["bb2"][li],
            n_head=n_head)
    return _layernorm(x, params["ln_f_gamma"], params["ln_f_beta"])


# ----------------------------------------------------------------------------
# deterministic synthetic params (weights pre-transposed as (in, out), stacked
# over layers, matmul weights stored in bf16)
# ----------------------------------------------------------------------------
def init_params(key, n_vocab, n_embd, n_tokens, n_layers):
    D, L = n_embd, n_layers
    keys = jax.random.split(key, 8)

    def nrm(k, shape, s=0.02):
        return s * jax.random.normal(k, shape, jnp.float32)

    return {
        "token_embedding": nrm(keys[0], (n_vocab, D)),
        "position_embedding": nrm(keys[1], (n_tokens, D)),
        "ln_f_gamma": jnp.ones((1, D), jnp.float32),
        "ln_f_beta": jnp.zeros((1, D), jnp.float32),
        "g1": jnp.ones((L, 1, D), jnp.float32),
        "b1": jnp.zeros((L, 1, D), jnp.float32),
        "win": nrm(keys[2], (L, D, 3 * D)).astype(jnp.bfloat16),
        "bin": nrm(keys[3], (L, 1, 3 * D), 0.01),
        "wout": nrm(keys[4], (L, D, D)).astype(jnp.bfloat16),
        "bout": nrm(keys[5], (L, 1, D), 0.01),
        "g2": jnp.ones((L, 1, D), jnp.float32),
        "b2": jnp.zeros((L, 1, D), jnp.float32),
        "w1": nrm(keys[6], (L, D, 4 * D)).astype(jnp.bfloat16),
        "bb1": jnp.zeros((L, 1, 4 * D), jnp.float32),
        "w2": nrm(keys[7], (L, 4 * D, D)).astype(jnp.bfloat16),
        "bb2": jnp.zeros((L, 1, D), jnp.float32),
    }


# ----------------------------------------------------------------------------
if __name__ == "__main__":
    # Small, module-consistent config (real CLIP: vocab=49408, D=768, S=77,
    # 12 heads, 12 layers).
    B, S, D = 2, 8, 64
    N_VOCAB, N_HEAD, N_LAYERS = 100, 4, 2

    key = jax.random.PRNGKey(0)
    pkey, tkey = jax.random.split(key)
    params = init_params(pkey, N_VOCAB, D, S, N_LAYERS)
    tokens = jax.random.randint(tkey, (B, S), 0, N_VOCAB, dtype=jnp.int32)

    out = jax.block_until_ready(clip_forward(tokens, params, N_HEAD))
    ref = jax.block_until_ready(clip_forward_ref(tokens, params, N_HEAD))

    np.testing.assert_allclose(np.asarray(out), np.asarray(ref),
                               rtol=2e-2, atol=2e-2)

    assert out.shape == (B, S, D) and out.dtype == jnp.float32
    print("KERNEL_OK")
</pallas_src>

<mosaic_0001>
module attributes {stable_mosaic.version = 11 : i64} {
  func.func @clip_stack_kernel(%arg0: i32, %arg1: i32, %arg2: memref<2x8x64xf32, #tpu.memory_space<vmem>>, %arg3: memref<1x1x64xf32, #tpu.memory_space<vmem>>, %arg4: memref<1x1x64xf32, #tpu.memory_space<vmem>>, %arg5: memref<1x64x192xbf16, #tpu.memory_space<vmem>>, %arg6: memref<1x1x192xf32, #tpu.memory_space<vmem>>, %arg7: memref<1x64x64xbf16, #tpu.memory_space<vmem>>, %arg8: memref<1x1x64xf32, #tpu.memory_space<vmem>>, %arg9: memref<1x1x64xf32, #tpu.memory_space<vmem>>, %arg10: memref<1x1x64xf32, #tpu.memory_space<vmem>>, %arg11: memref<1x64x256xbf16, #tpu.memory_space<vmem>>, %arg12: memref<1x1x256xf32, #tpu.memory_space<vmem>>, %arg13: memref<1x256x64xbf16, #tpu.memory_space<vmem>>, %arg14: memref<1x1x64xf32, #tpu.memory_space<vmem>>, %arg15: memref<1x64xf32, #tpu.memory_space<vmem>>, %arg16: memref<1x64xf32, #tpu.memory_space<vmem>>, %arg17: memref<2x8x64xf32, #tpu.memory_space<vmem>>, %arg18: memref<16x64xbf16, #tpu.memory_space<vmem>>) attributes {dimension_semantics = [#tpu.dimension_semantics<parallel>, #tpu.dimension_semantics<arbitrary>], iteration_bounds = array<i64: 1, 2>, scalar_prefetch = 0 : i64, scratch_operands = 1 : i64, tpu.core_type = #tpu.core_type<tc>, window_params = [{transform_indices = @transform_0, window_bounds = array<i64: 2, 8, 64>}, {transform_indices = @transform_1, window_bounds = array<i64: 1, 1, 64>}, {transform_indices = @transform_2, window_bounds = array<i64: 1, 1, 64>}, {transform_indices = @transform_3, window_bounds = array<i64: 1, 64, 192>}, {transform_indices = @transform_4, window_bounds = array<i64: 1, 1, 192>}, {transform_indices = @transform_5, window_bounds = array<i64: 1, 64, 64>}, {transform_indices = @transform_6, window_bounds = array<i64: 1, 1, 64>}, {transform_indices = @transform_7, window_bounds = array<i64: 1, 1, 64>}, {transform_indices = @transform_8, window_bounds = array<i64: 1, 1, 64>}, {transform_indices = @transform_9, window_bounds = array<i64: 1, 64, 256>}, {transform_indices = @transform_10, window_bounds = array<i64: 1, 1, 256>}, {transform_indices = @transform_11, window_bounds = array<i64: 1, 256, 64>}, {transform_indices = @transform_12, window_bounds = array<i64: 1, 1, 64>}, {pipeline_mode = #tpu.pipeline_mode<synchronous>, transform_indices = @transform_13, window_bounds = array<i64: 1, 64>}, {pipeline_mode = #tpu.pipeline_mode<synchronous>, transform_indices = @transform_14, window_bounds = array<i64: 1, 64>}, {transform_indices = @transform_15, window_bounds = array<i64: 2, 8, 64>}]} {
    %c0_i32 = arith.constant 0 : i32
    %0 = arith.cmpi eq, %arg1, %c0_i32 : i32
    %1 = arith.extui %0 : i1 to i32
    %c0_i32_0 = arith.constant 0 : i32
    %2 = arith.cmpi ne, %1, %c0_i32_0 : i32
    scf.if %2 {
      %c0_87 = arith.constant 0 : index
      %c0_88 = arith.constant 0 : index
      %c0_89 = arith.constant 0 : index
      %219 = vector.load %arg2[%c0_87, %c0_88, %c0_89] : memref<2x8x64xf32, #tpu.memory_space<vmem>>, vector<2x8x64xf32>
      %c0_90 = arith.constant 0 : index
      %c0_91 = arith.constant 0 : index
      %c0_92 = arith.constant 0 : index
      %220 = vector.load %arg17[%c0_90, %c0_91, %c0_92] : memref<2x8x64xf32, #tpu.memory_space<vmem>>, vector<2x8x64xf32>
      tpu.vector_store %arg17[%c0_90, %c0_91, %c0_92], %219 {strides = array<i32>} : memref<2x8x64xf32, #tpu.memory_space<vmem>>, vector<2x8x64xf32>,
    } else {
    }
    %c0 = arith.constant 0 : index
    %c0_1 = arith.constant 0 : index
    %c0_2 = arith.constant 0 : index
    %3 = vector.load %arg17[%c0, %c0_1, %c0_2] : memref<2x8x64xf32, #tpu.memory_space<vmem>>, vector<2x8x64xf32>
    %c0_3 = arith.constant 0 : index
    %c0_4 = arith.constant 0 : index
    %c0_5 = arith.constant 0 : index
    %4 = vector.load %arg3[%c0_3, %c0_4, %c0_5] : memref<1x1x64xf32, #tpu.memory_space<vmem>>, vector<1x1x64xf32>
    %5 = vector.shape_cast %4 : vector<1x1x64xf32> to vector<1x64xf32>
    %c0_6 = arith.constant 0 : index
    %c0_7 = arith.constant 0 : index
    %c0_8 = arith.constant 0 : index
    %6 = vector.load %arg4[%c0_6, %c0_7, %c0_8] : memref<1x1x64xf32, #tpu.memory_space<vmem>>, vector<1x1x64xf32>
    %7 = vector.shape_cast %6 : vector<1x1x64xf32> to vector<1x64xf32>
    %c0_9 = arith.constant 0 : index
    %c0_10 = arith.constant 0 : index
    %c0_11 = arith.constant 0 : index
    %8 = vector.load %arg5[%c0_9, %c0_10, %c0_11] : memref<1x64x192xbf16, #tpu.memory_space<vmem>>, vector<1x64x192xbf16>
    %9 = vector.shape_cast %8 : vector<1x64x192xbf16> to vector<64x192xbf16>
    %c0_12 = arith.constant 0 : index
    %c0_13 = arith.constant 0 : index
    %c0_14 = arith.constant 0 : index
    %10 = vector.load %arg6[%c0_12, %c0_13, %c0_14] : memref<1x1x192xf32, #tpu.memory_space<vmem>>, vector<1x1x192xf32>
    %11 = vector.shape_cast %10 : vector<1x1x192xf32> to vector<1x192xf32>
    %c0_15 = arith.constant 0 : index
    %c0_16 = arith.constant 0 : index
    %c0_17 = arith.constant 0 : index
    %12 = vector.load %arg7[%c0_15, %c0_16, %c0_17] : memref<1x64x64xbf16, #tpu.memory_space<vmem>>, vector<1x64x64xbf16>
    %13 = vector.shape_cast %12 : vector<1x64x64xbf16> to vector<64x64xbf16>
    %c0_18 = arith.constant 0 : index
    %c0_19 = arith.constant 0 : index
    %c0_20 = arith.constant 0 : index
    %14 = vector.load %arg8[%c0_18, %c0_19, %c0_20] : memref<1x1x64xf32, #tpu.memory_space<vmem>>, vector<1x1x64xf32>
    %15 = vector.shape_cast %14 : vector<1x1x64xf32> to vector<1x64xf32>
    %c0_21 = arith.constant 0 : index
    %c0_22 = arith.constant 0 : index
    %c0_23 = arith.constant 0 : index
    %16 = vector.load %arg9[%c0_21, %c0_22, %c0_23] : memref<1x1x64xf32, #tpu.memory_space<vmem>>, vector<1x1x64xf32>
    %17 = vector.shape_cast %16 : vector<1x1x64xf32> to vector<1x64xf32>
    %c0_24 = arith.constant 0 : index
    %c0_25 = arith.constant 0 : index
    %c0_26 = arith.constant 0 : index
    %18 = vector.load %arg10[%c0_24, %c0_25, %c0_26] : memref<1x1x64xf32, #tpu.memory_space<vmem>>, vector<1x1x64xf32>
    %19 = vector.shape_cast %18 : vector<1x1x64xf32> to vector<1x64xf32>
    %c0_27 = arith.constant 0 : index
    %c0_28 = arith.constant 0 : index
    %c0_29 = arith.constant 0 : index
    %20 = vector.load %arg11[%c0_27, %c0_28, %c0_29] : memref<1x64x256xbf16, #tpu.memory_space<vmem>>, vector<1x64x256xbf16>
    %21 = vector.shape_cast %20 : vector<1x64x256xbf16> to vector<64x256xbf16>
    %c0_30 = arith.constant 0 : index
    %c0_31 = arith.constant 0 : index
    %c0_32 = arith.constant 0 : index
    %22 = vector.load %arg12[%c0_30, %c0_31, %c0_32] : memref<1x1x256xf32, #tpu.memory_space<vmem>>, vector<1x1x256xf32>
    %23 = vector.shape_cast %22 : vector<1x1x256xf32> to vector<1x256xf32>
    %c0_33 = arith.constant 0 : index
    %c0_34 = arith.constant 0 : index
    %c0_35 = arith.constant 0 : index
    %24 = vector.load %arg13[%c0_33, %c0_34, %c0_35] : memref<1x256x64xbf16, #tpu.memory_space<vmem>>, vector<1x256x64xbf16>
    %25 = vector.shape_cast %24 : vector<1x256x64xbf16> to vector<256x64xbf16>
    %c0_36 = arith.constant 0 : index
    %c0_37 = arith.constant 0 : index
    %c0_38 = arith.constant 0 : index
    %26 = vector.load %arg14[%c0_36, %c0_37, %c0_38] : memref<1x1x64xf32, #tpu.memory_space<vmem>>, vector<1x1x64xf32>
    %27 = vector.shape_cast %26 : vector<1x1x64xf32> to vector<1x64xf32>
    %28 = vector.shape_cast %3 : vector<2x8x64xf32> to vector<16x64xf32>
    %cst = arith.constant dense<0.000000e+00> : vector<16xf32>
    %29 = vector.multi_reduction <add>, %28, %cst [1] : vector<16x64xf32> to vector<16xf32>
    %30 = vector.shape_cast %29 : vector<16xf32> to vector<16x1xf32>
    %cst_39 = arith.constant 6.400000e+01 : f32
    %31 = vector.broadcast %cst_39 : f32 to vector<16x1xf32>
    %32 = arith.divf %30, %31 : vector<16x1xf32>
    %33 = vector.broadcast %32 : vector<16x1xf32> to vector<16x64xf32>
    %34 = arith.subf %28, %33 : vector<16x64xf32>
    %35 = arith.mulf %34, %34 : vector<16x64xf32>
    %cst_40 = arith.constant dense<0.000000e+00> : vector<16xf32>
    %36 = vector.multi_reduction <add>, %35, %cst_40 [1] : vector<16x64xf32> to vector<16xf32>
    %37 = vector.shape_cast %36 : vector<16xf32> to vector<16x1xf32>
    %cst_41 = arith.constant 6.400000e+01 : f32
    %38 = vector.broadcast %cst_41 : f32 to vector<16x1xf32>
    %39 = arith.divf %37, %38 : vector<16x1xf32>
    %40 = vector.broadcast %32 : vector<16x1xf32> to vector<16x64xf32>
    %41 = arith.subf %28, %40 : vector<16x64xf32>
    %cst_42 = arith.constant 9.99999974E-6 : f32
    %42 = vector.broadcast %cst_42 : f32 to vector<16x1xf32>
    %43 = arith.addf %39, %42 : vector<16x1xf32>
    %44 = math.rsqrt %43 : vector<16x1xf32>
    %45 = vector.broadcast %44 : vector<16x1xf32> to vector<16x64xf32>
    %46 = arith.mulf %41, %45 : vector<16x64xf32>
    %47 = vector.broadcast %5 : vector<1x64xf32> to vector<16x64xf32>
    %48 = arith.mulf %46, %47 : vector<16x64xf32>
    %49 = vector.broadcast %7 : vector<1x64xf32> to vector<16x64xf32>
    %50 = arith.addf %48, %49 : vector<16x64xf32>
    %51 = arith.truncf %50 : vector<16x64xf32> to vector<16x64xbf16>
    %cst_43 = arith.constant dense<0.000000e+00> : vector<16x192xf32>
    %52 = tpu.matmul %51, %9, %cst_43 {dimension_numbers = #tpu.dot_dimension_numbers<[1], [0], [0], [1], [0, 0, 1, 1], [], []>} : vector<16x64xbf16>, vector<64x192xbf16>, vector<16x192xf32> -> vector<16x192xf32>
    %53 = vector.broadcast %11 : vector<1x192xf32> to vector<16x192xf32>
    %54 = arith.addf %52, %53 : vector<16x192xf32>
    %55 = arith.truncf %54 : vector<16x192xf32> to vector<16x192xbf16>
    %56 = tpu.iota {dimensions = array<i32: 0>} : vector<8x8xi32>
    %57 = tpu.iota {dimensions = array<i32: 1>} : vector<8x8xi32>
    %58 = arith.cmpi sle, %57, %56 : vector<8x8xi32>
    %59 = vector.shape_cast %58 : vector<8x8xi1> to vector<1x8x8xi1>
    %60 = vector.extract_strided_slice %55 {offsets = [0, 0], sizes = [16, 16], strides = [1, 1]} : vector<16x192xbf16> to vector<16x16xbf16>
    %61 = vector.shape_cast %60 : vector<16x16xbf16> to vector<2x8x16xbf16>
    %62 = vector.extract_strided_slice %55 {offsets = [0, 64], sizes = [16, 16], strides = [1, 1]} : vector<16x192xbf16> to vector<16x16xbf16>
    %63 = vector.shape_cast %62 : vector<16x16xbf16> to vector<2x8x16xbf16>
    %64 = vector.extract_strided_slice %55 {offsets = [0, 128], sizes = [16, 16], strides = [1, 1]} : vector<16x192xbf16> to vector<16x16xbf16>
    %65 = vector.shape_cast %64 : vector<16x16xbf16> to vector<2x8x16xbf16>
    "tpu.trace_start"() <{level = 10 : i32, message = "bqd,bkd->bqk"}> : () -> ()
    %cst_44 = arith.constant dense<0.000000e+00> : vector<2x8x8xf32>
    %66 = tpu.matmul %61, %63, %cst_44 {dimension_numbers = #tpu.dot_dimension_numbers<[2], [2], [1], [1], [0, 0, 0, 1, 1, 1], [0], [0]>} : vector<2x8x16xbf16>, vector<2x8x16xbf16>, vector<2x8x8xf32> -> vector<2x8x8xf32>
    "tpu.trace_stop"() : () -> ()
    %cst_45 = arith.constant 2.500000e-01 : f32
    %67 = vector.broadcast %cst_45 : f32 to vector<2x8x8xf32>
    %68 = arith.mulf %66, %67 : vector<2x8x8xf32>
    %cst_46 = arith.constant -1.000000e+30 : f32
    %69 = vector.shape_cast %59 : vector<1x8x8xi1> to vector<1x8x8xi1>
    %70 = vector.broadcast %69 : vector<1x8x8xi1> to vector<2x8x8xi1>
    %71 = vector.broadcast %cst_46 : f32 to vector<2x8x8xf32>
    %72 = arith.select %70, %68, %71 : vector<2x8x8xi1>, vector<2x8x8xf32>
    %cst_47 = arith.constant dense<0xFF800000> : vector<2x8xf32>
    %73 = vector.multi_reduction <maximumf>, %72, %cst_47 [2] : vector<2x8x8xf32> to vector<2x8xf32>
    %74 = vector.shape_cast %73 : vector<2x8xf32> to vector<2x8x1xf32>
    %75 = vector.broadcast %74 : vector<2x8x1xf32> to vector<2x8x8xf32>
    %76 = arith.subf %72, %75 : vector<2x8x8xf32>
    %77 = math.exp %76 : vector<2x8x8xf32>
    %cst_48 = arith.constant dense<0.000000e+00> : vector<2x8xf32>
    %78 = vector.multi_reduction <add>, %77, %cst_48 [2] : vector<2x8x8xf32> to vector<2x8xf32>
    %79 = vector.shape_cast %78 : vector<2x8xf32> to vector<2x8x1xf32>
    %80 = vector.broadcast %79 : vector<2x8x1xf32> to vector<2x8x8xf32>
    %81 = arith.divf %77, %80 : vector<2x8x8xf32>
    %82 = arith.truncf %81 : vector<2x8x8xf32> to vector<2x8x8xbf16>
    "tpu.trace_start"() <{level = 10 : i32, message = "bqk,bkd->bqd"}> : () -> ()
    %cst_49 = arith.constant dense<0.000000e+00> : vector<2x8x16xf32>
    %83 = tpu.matmul %82, %65, %cst_49 {dimension_numbers = #tpu.dot_dimension_numbers<[2], [1], [1], [2], [0, 0, 0, 1, 1, 2], [0], [0]>} : vector<2x8x8xbf16>, vector<2x8x16xbf16>, vector<2x8x16xf32> -> vector<2x8x16xf32>
    "tpu.trace_stop"() : () -> ()
    %84 = arith.truncf %83 : vector<2x8x16xf32> to vector<2x8x16xbf16>
    %85 = vector.shape_cast %84 : vector<2x8x16xbf16> to vector<16x16xbf16>
    %c0_50 = arith.constant 0 : index
    %c0_51 = arith.constant 0 : index
    %86 = vector.load %arg18[%c0_50, %c0_51] : memref<16x64xbf16, #tpu.memory_space<vmem>>, vector<16x16xbf16>
    tpu.vector_store %arg18[%c0_50, %c0_51], %85 {strides = array<i32>} : memref<16x64xbf16, #tpu.memory_space<vmem>>, vector<16x16xbf16>,
    %87 = vector.extract_strided_slice %55 {offsets = [0, 16], sizes = [16, 16], strides = [1, 1]} : vector<16x192xbf16> to vector<16x16xbf16>
    %88 = vector.shape_cast %87 : vector<16x16xbf16> to vector<2x8x16xbf16>
    %89 = vector.extract_strided_slice %55 {offsets = [0, 80], sizes = [16, 16], strides = [1, 1]} : vector<16x192xbf16> to vector<16x16xbf16>
    %90 = vector.shape_cast %89 : vector<16x16xbf16> to vector<2x8x16xbf16>
    %91 = vector.extract_strided_slice %55 {offsets = [0, 144], sizes = [16, 16], strides = [1, 1]} : vector<16x192xbf16> to vector<16x16xbf16>
    %92 = vector.shape_cast %91 : vector<16x16xbf16> to vector<2x8x16xbf16>
    "tpu.trace_start"() <{level = 10 : i32, message = "bqd,bkd->bqk"}> : () -> ()
    %cst_52 = arith.constant dense<0.000000e+00> : vector<2x8x8xf32>
    %93 = tpu.matmul %88, %90, %cst_52 {dimension_numbers = #tpu.dot_dimension_numbers<[2], [2], [1], [1], [0, 0, 0, 1, 1, 1], [0], [0]>} : vector<2x8x16xbf16>, vector<2x8x16xbf16>, vector<2x8x8xf32> -> vector<2x8x8xf32>
    "tpu.trace_stop"() : () -> ()
    %cst_53 = arith.constant 2.500000e-01 : f32
    %94 = vector.broadcast %cst_53 : f32 to vector<2x8x8xf32>
    %95 = arith.mulf %93, %94 : vector<2x8x8xf32>
    %cst_54 = arith.constant -1.000000e+30 : f32
    %96 = vector.shape_cast %59 : vector<1x8x8xi1> to vector<1x8x8xi1>
    %97 = vector.broadcast %96 : vector<1x8x8xi1> to vector<2x8x8xi1>
    %98 = vector.broadcast %cst_54 : f32 to vector<2x8x8xf32>
    %99 = arith.select %97, %95, %98 : vector<2x8x8xi1>, vector<2x8x8xf32>
    %cst_55 = arith.constant dense<0xFF800000> : vector<2x8xf32>
    %100 = vector.multi_reduction <maximumf>, %99, %cst_55 [2] : vector<2x8x8xf32> to vector<2x8xf32>
    %101 = vector.shape_cast %100 : vector<2x8xf32> to vector<2x8x1xf32>
    %102 = vector.broadcast %101 : vector<2x8x1xf32> to vector<2x8x8xf32>
    %103 = arith.subf %99, %102 : vector<2x8x8xf32>
    %104 = math.exp %103 : vector<2x8x8xf32>
    %cst_56 = arith.constant dense<0.000000e+00> : vector<2x8xf32>
    %105 = vector.multi_reduction <add>, %104, %cst_56 [2] : vector<2x8x8xf32> to vector<2x8xf32>
    %106 = vector.shape_cast %105 : vector<2x8xf32> to vector<2x8x1xf32>
    %107 = vector.broadcast %106 : vector<2x8x1xf32> to vector<2x8x8xf32>
    %108 = arith.divf %104, %107 : vector<2x8x8xf32>
    %109 = arith.truncf %108 : vector<2x8x8xf32> to vector<2x8x8xbf16>
    "tpu.trace_start"() <{level = 10 : i32, message = "bqk,bkd->bqd"}> : () -> ()
    %cst_57 = arith.constant dense<0.000000e+00> : vector<2x8x16xf32>
    %110 = tpu.matmul %109, %92, %cst_57 {dimension_numbers = #tpu.dot_dimension_numbers<[2], [1], [1], [2], [0, 0, 0, 1, 1, 2], [0], [0]>} : vector<2x8x8xbf16>, vector<2x8x16xbf16>, vector<2x8x16xf32> -> vector<2x8x16xf32>
    "tpu.trace_stop"() : () -> ()
    %111 = arith.truncf %110 : vector<2x8x16xf32> to vector<2x8x16xbf16>
    %112 = vector.shape_cast %111 : vector<2x8x16xbf16> to vector<16x16xbf16>
    %c0_58 = arith.constant 0 : index
    %c16 = arith.constant 16 : index
    %113 = vector.load %arg18[%c0_58, %c16] : memref<16x64xbf16, #tpu.memory_space<vmem>>, vector<16x16xbf16>
    tpu.vector_store %arg18[%c0_58, %c16], %112 {strides = array<i32>} : memref<16x64xbf16, #tpu.memory_space<vmem>>, vector<16x16xbf16>,
    %114 = vector.extract_strided_slice %55 {offsets = [0, 32], sizes = [16, 16], strides = [1, 1]} : vector<16x192xbf16> to vector<16x16xbf16>
    %115 = vector.shape_cast %114 : vector<16x16xbf16> to vector<2x8x16xbf16>
    %116 = vector.extract_strided_slice %55 {offsets = [0, 96], sizes = [16, 16], strides = [1, 1]} : vector<16x192xbf16> to vector<16x16xbf16>
    %117 = vector.shape_cast %116 : vector<16x16xbf16> to vector<2x8x16xbf16>
    %118 = vector.extract_strided_slice %55 {offsets = [0, 160], sizes = [16, 16], strides = [1, 1]} : vector<16x192xbf16> to vector<16x16xbf16>
    %119 = vector.shape_cast %118 : vector<16x16xbf16> to vector<2x8x16xbf16>
    "tpu.trace_start"() <{level = 10 : i32, message = "bqd,bkd->bqk"}> : () -> ()
    %cst_59 = arith.constant dense<0.000000e+00> : vector<2x8x8xf32>
    %120 = tpu.matmul %115, %117, %cst_59 {dimension_numbers = #tpu.dot_dimension_numbers<[2], [2], [1], [1], [0, 0, 0, 1, 1, 1], [0], [0]>} : vector<2x8x16xbf16>, vector<2x8x16xbf16>, vector<2x8x8xf32> -> vector<2x8x8xf32>
    "tpu.trace_stop"() : () -> ()
    %cst_60 = arith.constant 2.500000e-01 : f32
    %121 = vector.broadcast %cst_60 : f32 to vector<2x8x8xf32>
    %122 = arith.mulf %120, %121 : vector<2x8x8xf32>
    %cst_61 = arith.constant -1.000000e+30 : f32
    %123 = vector.shape_cast %59 : vector<1x8x8xi1> to vector<1x8x8xi1>
    %124 = vector.broadcast %123 : vector<1x8x8xi1> to vector<2x8x8xi1>
    %125 = vector.broadcast %cst_61 : f32 to vector<2x8x8xf32>
    %126 = arith.select %124, %122, %125 : vector<2x8x8xi1>, vector<2x8x8xf32>
    %cst_62 = arith.constant dense<0xFF800000> : vector<2x8xf32>
    %127 = vector.multi_reduction <maximumf>, %126, %cst_62 [2] : vector<2x8x8xf32> to vector<2x8xf32>
    %128 = vector.shape_cast %127 : vector<2x8xf32> to vector<2x8x1xf32>
    %129 = vector.broadcast %128 : vector<2x8x1xf32> to vector<2x8x8xf32>
    %130 = arith.subf %126, %129 : vector<2x8x8xf32>
    %131 = math.exp %130 : vector<2x8x8xf32>
    %cst_63 = arith.constant dense<0.000000e+00> : vector<2x8xf32>
    %132 = vector.multi_reduction <add>, %131, %cst_63 [2] : vector<2x8x8xf32> to vector<2x8xf32>
    %133 = vector.shape_cast %132 : vector<2x8xf32> to vector<2x8x1xf32>
    %134 = vector.broadcast %133 : vector<2x8x1xf32> to vector<2x8x8xf32>
    %135 = arith.divf %131, %134 : vector<2x8x8xf32>
    %136 = arith.truncf %135 : vector<2x8x8xf32> to vector<2x8x8xbf16>
    "tpu.trace_start"() <{level = 10 : i32, message = "bqk,bkd->bqd"}> : () -> ()
    %cst_64 = arith.constant dense<0.000000e+00> : vector<2x8x16xf32>
    %137 = tpu.matmul %136, %119, %cst_64 {dimension_numbers = #tpu.dot_dimension_numbers<[2], [1], [1], [2], [0, 0, 0, 1, 1, 2], [0], [0]>} : vector<2x8x8xbf16>, vector<2x8x16xbf16>, vector<2x8x16xf32> -> vector<2x8x16xf32>
    "tpu.trace_stop"() : () -> ()
    %138 = arith.truncf %137 : vector<2x8x16xf32> to vector<2x8x16xbf16>
    %139 = vector.shape_cast %138 : vector<2x8x16xbf16> to vector<16x16xbf16>
    %c0_65 = arith.constant 0 : index
    %c32 = arith.constant 32 : index
    %140 = vector.load %arg18[%c0_65, %c32] : memref<16x64xbf16, #tpu.memory_space<vmem>>, vector<16x16xbf16>
    tpu.vector_store %arg18[%c0_65, %c32], %139 {strides = array<i32>} : memref<16x64xbf16, #tpu.memory_space<vmem>>, vector<16x16xbf16>,
    %141 = vector.extract_strided_slice %55 {offsets = [0, 48], sizes = [16, 16], strides = [1, 1]} : vector<16x192xbf16> to vector<16x16xbf16>
    %142 = vector.shape_cast %141 : vector<16x16xbf16> to vector<2x8x16xbf16>
    %143 = vector.extract_strided_slice %55 {offsets = [0, 112], sizes = [16, 16], strides = [1, 1]} : vector<16x192xbf16> to vector<16x16xbf16>
    %144 = vector.shape_cast %143 : vector<16x16xbf16> to vector<2x8x16xbf16>
    %145 = vector.extract_strided_slice %55 {offsets = [0, 176], sizes = [16, 16], strides = [1, 1]} : vector<16x192xbf16> to vector<16x16xbf16>
    %146 = vector.shape_cast %145 : vector<16x16xbf16> to vector<2x8x16xbf16>
    "tpu.trace_start"() <{level = 10 : i32, message = "bqd,bkd->bqk"}> : () -> ()
    %cst_66 = arith.constant dense<0.000000e+00> : vector<2x8x8xf32>
    %147 = tpu.matmul %142, %144, %cst_66 {dimension_numbers = #tpu.dot_dimension_numbers<[2], [2], [1], [1], [0, 0, 0, 1, 1, 1], [0], [0]>} : vector<2x8x16xbf16>, vector<2x8x16xbf16>, vector<2x8x8xf32> -> vector<2x8x8xf32>
    "tpu.trace_stop"() : () -> ()
    %cst_67 = arith.constant 2.500000e-01 : f32
    %148 = vector.broadcast %cst_67 : f32 to vector<2x8x8xf32>
    %149 = arith.mulf %147, %148 : vector<2x8x8xf32>
    %cst_68 = arith.constant -1.000000e+30 : f32
    %150 = vector.shape_cast %59 : vector<1x8x8xi1> to vector<1x8x8xi1>
    %151 = vector.broadcast %150 : vector<1x8x8xi1> to vector<2x8x8xi1>
    %152 = vector.broadcast %cst_68 : f32 to vector<2x8x8xf32>
    %153 = arith.select %151, %149, %152 : vector<2x8x8xi1>, vector<2x8x8xf32>
    %cst_69 = arith.constant dense<0xFF800000> : vector<2x8xf32>
    %154 = vector.multi_reduction <maximumf>, %153, %cst_69 [2] : vector<2x8x8xf32> to vector<2x8xf32>
    %155 = vector.shape_cast %154 : vector<2x8xf32> to vector<2x8x1xf32>
    %156 = vector.broadcast %155 : vector<2x8x1xf32> to vector<2x8x8xf32>
    %157 = arith.subf %153, %156 : vector<2x8x8xf32>
    %158 = math.exp %157 : vector<2x8x8xf32>
    %cst_70 = arith.constant dense<0.000000e+00> : vector<2x8xf32>
    %159 = vector.multi_reduction <add>, %158, %cst_70 [2] : vector<2x8x8xf32> to vector<2x8xf32>
    %160 = vector.shape_cast %159 : vector<2x8xf32> to vector<2x8x1xf32>
    %161 = vector.broadcast %160 : vector<2x8x1xf32> to vector<2x8x8xf32>
    %162 = arith.divf %158, %161 : vector<2x8x8xf32>
    %163 = arith.truncf %162 : vector<2x8x8xf32> to vector<2x8x8xbf16>
    "tpu.trace_start"() <{level = 10 : i32, message = "bqk,bkd->bqd"}> : () -> ()
    %cst_71 = arith.constant dense<0.000000e+00> : vector<2x8x16xf32>
    %164 = tpu.matmul %163, %146, %cst_71 {dimension_numbers = #tpu.dot_dimension_numbers<[2], [1], [1], [2], [0, 0, 0, 1, 1, 2], [0], [0]>} : vector<2x8x8xbf16>, vector<2x8x16xbf16>, vector<2x8x16xf32> -> vector<2x8x16xf32>
    "tpu.trace_stop"() : () -> ()
    %165 = arith.truncf %164 : vector<2x8x16xf32> to vector<2x8x16xbf16>
    %166 = vector.shape_cast %165 : vector<2x8x16xbf16> to vector<16x16xbf16>
    %c0_72 = arith.constant 0 : index
    %c48 = arith.constant 48 : index
    %167 = vector.load %arg18[%c0_72, %c48] : memref<16x64xbf16, #tpu.memory_space<vmem>>, vector<16x16xbf16>
    tpu.vector_store %arg18[%c0_72, %c48], %166 {strides = array<i32>} : memref<16x64xbf16, #tpu.memory_space<vmem>>, vector<16x16xbf16>,
    %c0_73 = arith.constant 0 : index
    %c0_74 = arith.constant 0 : index
    %168 = vector.load %arg18[%c0_73, %c0_74] : memref<16x64xbf16, #tpu.memory_space<vmem>>, vector<16x64xbf16>
    %cst_75 = arith.constant dense<0.000000e+00> : vector<16x64xf32>
    %169 = tpu.matmul %168, %13, %cst_75 {dimension_numbers = #tpu.dot_dimension_numbers<[1], [0], [0], [1], [0, 0, 1, 1], [], []>} : vector<16x64xbf16>, vector<64x64xbf16>, vector<16x64xf32> -> vector<16x64xf32>
    %170 = vector.broadcast %15 : vector<1x64xf32> to vector<16x64xf32>
    %171 = arith.addf %169, %170 : vector<16x64xf32>
    %172 = arith.addf %171, %28 : vector<16x64xf32>
    %cst_76 = arith.constant dense<0.000000e+00> : vector<16xf32>
    %173 = vector.multi_reduction <add>, %172, %cst_76 [1] : vector<16x64xf32> to vector<16xf32>
    %174 = vector.shape_cast %173 : vector<16xf32> to vector<16x1xf32>
    %cst_77 = arith.constant 6.400000e+01 : f32
    %175 = vector.broadcast %cst_77 : f32 to vector<16x1xf32>
    %176 = arith.divf %174, %175 : vector<16x1xf32>
    %177 = vector.broadcast %176 : vector<16x1xf32> to vector<16x64xf32>
    %178 = arith.subf %172, %177 : vector<16x64xf32>
    %179 = arith.mulf %178, %178 : vector<16x64xf32>
    %cst_78 = arith.constant dense<0.000000e+00> : vector<16xf32>
    %180 = vector.multi_reduction <add>, %179, %cst_78 [1] : vector<16x64xf32> to vector<16xf32>
    %181 = vector.shape_cast %180 : vector<16xf32> to vector<16x1xf32>
    %cst_79 = arith.constant 6.400000e+01 : f32
    %182 = vector.broadcast %cst_79 : f32 to vector<16x1xf32>
    %183 = arith.divf %181, %182 : vector<16x1xf32>
    %184 = vector.broadcast %176 : vector<16x1xf32> to vector<16x64xf32>
    %185 = arith.subf %172, %184 : vector<16x64xf32>
    %cst_80 = arith.constant 9.99999974E-6 : f32
    %186 = vector.broadcast %cst_80 : f32 to vector<16x1xf32>
    %187 = arith.addf %183, %186 : vector<16x1xf32>
    %188 = math.rsqrt %187 : vector<16x1xf32>
    %189 = vector.broadcast %188 : vector<16x1xf32> to vector<16x64xf32>
    %190 = arith.mulf %185, %189 : vector<16x64xf32>
    %191 = vector.broadcast %17 : vector<1x64xf32> to vector<16x64xf32>
    %192 = arith.mulf %190, %191 : vector<16x64xf32>
    %193 = vector.broadcast %19 : vector<1x64xf32> to vector<16x64xf32>
    %194 = arith.addf %192, %193 : vector<16x64xf32>
    %195 = arith.truncf %194 : vector<16x64xf32> to vector<16x64xbf16>
    %cst_81 = arith.constant dense<0.000000e+00> : vector<16x256xf32>
    %196 = tpu.matmul %195, %21, %cst_81 {dimension_numbers = #tpu.dot_dimension_numbers<[1], [0], [0], [1], [0, 0, 1, 1], [], []>} : vector<16x64xbf16>, vector<64x256xbf16>, vector<16x256xf32> -> vector<16x256xf32>
    %197 = vector.broadcast %23 : vector<1x256xf32> to vector<16x256xf32>
    %198 = arith.addf %196, %197 : vector<16x256xf32>
    %cst_82 = arith.constant 1.702000e+00 : f32
    %199 = vector.broadcast %cst_82 : f32 to vector<16x256xf32>
    %200 = arith.mulf %199, %198 : vector<16x256xf32>
    %201 = arith.negf %200 : vector<16x256xf32>
    %202 = math.exp %201 : vector<16x256xf32>
    %cst_83 = arith.constant 1.000000e+00 : f32
    %203 = vector.broadcast %cst_83 : f32 to vector<16x256xf32>
    %204 = arith.addf %203, %202 : vector<16x256xf32>
    %205 = arith.divf %203, %204 : vector<16x256xf32>
    %206 = arith.mulf %198, %205 : vector<16x256xf32>
    %207 = arith.truncf %206 : vector<16x256xf32> to vector<16x256xbf16>
    %cst_84 = arith.constant dense<0.000000e+00> : vector<16x64xf32>
    %208 = tpu.matmul %207, %25, %cst_84 {dimension_numbers = #tpu.dot_dimension_numbers<[1], [0], [0], [1], [0, 0, 1, 1], [], []>} : vector<16x256xbf16>, vector<256x64xbf16>, vector<16x64xf32> -> vector<16x64xf32>
    %209 = vector.broadcast %27 : vector<1x64xf32> to vector<16x64xf32>
    %210 = arith.addf %208, %209 : vector<16x64xf32>
    %211 = arith.addf %210, %172 : vector<16x64xf32>
    %212 = vector.shape_cast %211 : vector<16x64xf32> to vector<2x8x64xf32>
    %c1_i32 = arith.constant 1 : i32
    %213 = arith.cmpi eq, %arg1, %c1_i32 : i32
    %true = arith.constant true
    %214 = arith.xori %213, %true : i1
    %215 = arith.extui %214 : i1 to i32
    %c0_i32_85 = arith.constant 0 : i32
    %216 = arith.cmpi ne, %215, %c0_i32_85 : i32
    scf.if %216 {
      %c0_87 = arith.constant 0 : index
      %c0_88 = arith.constant 0 : index
      %c0_89 = arith.constant 0 : index
      %219 = vector.load %arg17[%c0_87, %c0_88, %c0_89] : memref<2x8x64xf32, #tpu.memory_space<vmem>>, vector<2x8x64xf32>
      tpu.vector_store %arg17[%c0_87, %c0_88, %c0_89], %212 {strides = array<i32>} : memref<2x8x64xf32, #tpu.memory_space<vmem>>, vector<2x8x64xf32>,
    } else {
    }
    %217 = arith.extui %213 : i1 to i32
    %c0_i32_86 = arith.constant 0 : i32
    %218 = arith.cmpi ne, %217, %c0_i32_86 : i32
    scf.if %218 {
      %c0_87 = arith.constant 0 : index
      %c0_88 = arith.constant 0 : index
      %219 = vector.load %arg15[%c0_87, %c0_88] : memref<1x64xf32, #tpu.memory_space<vmem>>, vector<1x64xf32>
      %c0_89 = arith.constant 0 : index
      %c0_90 = arith.constant 0 : index
      %220 = vector.load %arg16[%c0_89, %c0_90] : memref<1x64xf32, #tpu.memory_space<vmem>>, vector<1x64xf32>
      %cst_91 = arith.constant dense<0.000000e+00> : vector<2x8xf32>
      %221 = vector.multi_reduction <add>, %212, %cst_91 [2] : vector<2x8x64xf32> to vector<2x8xf32>
      %222 = vector.shape_cast %221 : vector<2x8xf32> to vector<2x8x1xf32>
      %cst_92 = arith.constant 6.400000e+01 : f32
      %223 = vector.broadcast %cst_92 : f32 to vector<2x8x1xf32>
      %224 = arith.divf %222, %223 : vector<2x8x1xf32>
      %225 = vector.broadcast %224 : vector<2x8x1xf32> to vector<2x8x64xf32>
      %226 = arith.subf %212, %225 : vector<2x8x64xf32>
      %227 = arith.mulf %226, %226 : vector<2x8x64xf32>
      %cst_93 = arith.constant dense<0.000000e+00> : vector<2x8xf32>
      %228 = vector.multi_reduction <add>, %227, %cst_93 [2] : vector<2x8x64xf32> to vector<2x8xf32>
      %229 = vector.shape_cast %228 : vector<2x8xf32> to vector<2x8x1xf32>
      %cst_94 = arith.constant 6.400000e+01 : f32
      %230 = vector.broadcast %cst_94 : f32 to vector<2x8x1xf32>
      %231 = arith.divf %229, %230 : vector<2x8x1xf32>
      %232 = vector.broadcast %224 : vector<2x8x1xf32> to vector<2x8x64xf32>
      %233 = arith.subf %212, %232 : vector<2x8x64xf32>
      %cst_95 = arith.constant 9.99999974E-6 : f32
      %234 = vector.broadcast %cst_95 : f32 to vector<2x8x1xf32>
      %235 = arith.addf %231, %234 : vector<2x8x1xf32>
      %236 = math.rsqrt %235 : vector<2x8x1xf32>
      %237 = vector.broadcast %236 : vector<2x8x1xf32> to vector<2x8x64xf32>
      %238 = arith.mulf %233, %237 : vector<2x8x64xf32>
      %239 = vector.shape_cast %219 : vector<1x64xf32> to vector<1x1x64xf32>
      %240 = vector.broadcast %239 : vector<1x1x64xf32> to vector<2x8x64xf32>
      %241 = arith.mulf %238, %240 : vector<2x8x64xf32>
      %242 = vector.shape_cast %220 : vector<1x64xf32> to vector<1x1x64xf32>
      %243 = vector.broadcast %242 : vector<1x1x64xf32> to vector<2x8x64xf32>
      %244 = arith.addf %241, %243 : vector<2x8x64xf32>
      %c0_96 = arith.constant 0 : index
      %c0_97 = arith.constant 0 : index
      %c0_98 = arith.constant 0 : index
      %245 = vector.load %arg17[%c0_96, %c0_97, %c0_98] : memref<2x8x64xf32, #tpu.memory_space<vmem>>, vector<2x8x64xf32>
      tpu.vector_store %arg17[%c0_96, %c0_97, %c0_98], %244 {strides = array<i32>} : memref<2x8x64xf32, #tpu.memory_space<vmem>>, vector<2x8x64xf32>,
    } else {
    }
    return
  }
  func.func @transform_0(%arg0: i32, %arg1: i32) -> (i32, i32, i32) {
    %c0_i32 = arith.constant 0 : i32
    %c0_i32_0 = arith.constant 0 : i32
    %c0_i32_1 = arith.constant 0 : i32
    return %arg0, %c0_i32, %c0_i32_0 : i32, i32, i32
  }
  func.func @transform_1(%arg0: i32, %arg1: i32) -> (i32, i32, i32) {
    %c0_i32 = arith.constant 0 : i32
    %c0_i32_0 = arith.constant 0 : i32
    %c0_i32_1 = arith.constant 0 : i32
    return %arg1, %c0_i32, %c0_i32_0 : i32, i32, i32
  }
  func.func @transform_2(%arg0: i32, %arg1: i32) -> (i32, i32, i32) {
    %c0_i32 = arith.constant 0 : i32
    %c0_i32_0 = arith.constant 0 : i32
    %c0_i32_1 = arith.constant 0 : i32
    return %arg1, %c0_i32, %c0_i32_0 : i32, i32, i32
  }
  func.func @transform_3(%arg0: i32, %arg1: i32) -> (i32, i32, i32) {
    %c0_i32 = arith.constant 0 : i32
    %c0_i32_0 = arith.constant 0 : i32
    %c0_i32_1 = arith.constant 0 : i32
    return %arg1, %c0_i32, %c0_i32_0 : i32, i32, i32
  }
  func.func @transform_4(%arg0: i32, %arg1: i32) -> (i32, i32, i32) {
    %c0_i32 = arith.constant 0 : i32
    %c0_i32_0 = arith.constant 0 : i32
    %c0_i32_1 = arith.constant 0 : i32
    return %arg1, %c0_i32, %c0_i32_0 : i32, i32, i32
  }
  func.func @transform_5(%arg0: i32, %arg1: i32) -> (i32, i32, i32) {
    %c0_i32 = arith.constant 0 : i32
    %c0_i32_0 = arith.constant 0 : i32
    %c0_i32_1 = arith.constant 0 : i32
    return %arg1, %c0_i32, %c0_i32_0 : i32, i32, i32
  }
  func.func @transform_6(%arg0: i32, %arg1: i32) -> (i32, i32, i32) {
    %c0_i32 = arith.constant 0 : i32
    %c0_i32_0 = arith.constant 0 : i32
    %c0_i32_1 = arith.constant 0 : i32
    return %arg1, %c0_i32, %c0_i32_0 : i32, i32, i32
  }
  func.func @transform_7(%arg0: i32, %arg1: i32) -> (i32, i32, i32) {
    %c0_i32 = arith.constant 0 : i32
    %c0_i32_0 = arith.constant 0 : i32
    %c0_i32_1 = arith.constant 0 : i32
    return %arg1, %c0_i32, %c0_i32_0 : i32, i32, i32
  }
  func.func @transform_8(%arg0: i32, %arg1: i32) -> (i32, i32, i32) {
    %c0_i32 = arith.constant 0 : i32
    %c0_i32_0 = arith.constant 0 : i32
    %c0_i32_1 = arith.constant 0 : i32
    return %arg1, %c0_i32, %c0_i32_0 : i32, i32, i32
  }
  func.func @transform_9(%arg0: i32, %arg1: i32) -> (i32, i32, i32) {
    %c0_i32 = arith.constant 0 : i32
    %c0_i32_0 = arith.constant 0 : i32
    %c0_i32_1 = arith.constant 0 : i32
    return %arg1, %c0_i32, %c0_i32_0 : i32, i32, i32
  }
  func.func @transform_10(%arg0: i32, %arg1: i32) -> (i32, i32, i32) {
    %c0_i32 = arith.constant 0 : i32
    %c0_i32_0 = arith.constant 0 : i32
    %c0_i32_1 = arith.constant 0 : i32
    return %arg1, %c0_i32, %c0_i32_0 : i32, i32, i32
  }
  func.func @transform_11(%arg0: i32, %arg1: i32) -> (i32, i32, i32) {
    %c0_i32 = arith.constant 0 : i32
    %c0_i32_0 = arith.constant 0 : i32
    %c0_i32_1 = arith.constant 0 : i32
    return %arg1, %c0_i32, %c0_i32_0 : i32, i32, i32
  }
  func.func @transform_12(%arg0: i32, %arg1: i32) -> (i32, i32, i32) {
    %c0_i32 = arith.constant 0 : i32
    %c0_i32_0 = arith.constant 0 : i32
    %c0_i32_1 = arith.constant 0 : i32
    return %arg1, %c0_i32, %c0_i32_0 : i32, i32, i32
  }
  func.func @transform_13(%arg0: i32, %arg1: i32) -> (i32, i32) {
    %c0_i32 = arith.constant 0 : i32
    %c0_i32_0 = arith.constant 0 : i32
    %c0_i32_1 = arith.constant 0 : i32
    return %c0_i32, %c0_i32_0 : i32, i32
  }
  func.func @transform_14(%arg0: i32, %arg1: i32) -> (i32, i32) {
    %c0_i32 = arith.constant 0 : i32
    %c0_i32_0 = arith.constant 0 : i32
    %c0_i32_1 = arith.constant 0 : i32
    return %c0_i32, %c0_i32_0 : i32, i32
  }
  func.func @transform_15(%arg0: i32, %arg1: i32) -> (i32, i32, i32) {
    %c0_i32 = arith.constant 0 : i32
    %c0_i32_0 = arith.constant 0 : i32
    %c0_i32_1 = arith.constant 0 : i32
    return %arg0, %c0_i32, %c0_i32_0 : i32, i32, i32
  }
}

</mosaic_0001>

<bundles_post_ra>
// kernel: tpu_custom_call.1
= control target key start
LH: loop header
LB: loop body
LE: loop exit
PB: predicated region body
PF: predicated region fallthrough
CT: control target
= control target key end

     0   :  { %s3508_s0 = inlined_call_operand.vmem [shape: f32[2,8,64], index: 0, kind: input, shape index: {}]   ;;  %s3509_s1 = inlined_call_operand.vmem [shape: f32[2,1,64], index: 1, kind: input, shape index: {}]   ;;  %s3510_s2 = inlined_call_operand.vmem [shape: f32[2,1,64], index: 2, kind: input, shape index: {}]   ;;  %s3511_s3 = inlined_call_operand.vmem [shape: bf16[2,64,192], index: 3, kind: input, shape index: {}]   ;;  %s3512_s4 = inlined_call_operand.vmem [shape: f32[2,1,192], index: 4, kind: input, shape index: {}]   ;;  %s3513_s5 = inlined_call_operand.vmem [shape: bf16[2,64,64], index: 5, kind: input, shape index: {}]   ;;  %s3514_s6 = inlined_call_operand.vmem [shape: f32[2,1,64], index: 6, kind: input, shape index: {}]   ;;  %s3515_s7 = inlined_call_operand.vmem [shape: f32[2,1,64], index: 7, kind: input, shape index: {}]   ;;  %s3516_s8 = inlined_call_operand.vmem [shape: f32[2,1,64], index: 8, kind: input, shape index: {}]   ;;  %s3517_s9 = inlined_call_operand.vmem [shape: bf16[2,64,256], index: 9, kind: input, shape index: {}]   ;;  %s3518_s10 = inlined_call_operand.vmem [shape: f32[2,1,256], index: 10, kind: input, shape index: {}]   ;;  %s3519_s11 = inlined_call_operand.vmem [shape: bf16[2,256,64], index: 11, kind: input, shape index: {}]   ;;  %s3520_s12 = inlined_call_operand.vmem [shape: f32[2,1,64], index: 12, kind: input, shape index: {}]   ;;  %s3521_s13 = inlined_call_operand.vmem [shape: f32[1,64], index: 13, kind: input, shape index: {}]   ;;  %s3522_s14 = inlined_call_operand.vmem [shape: f32[1,64], index: 14, kind: input, shape index: {}]   ;;  %s3523_s15 = inlined_call_operand.hbm [shape: f32[2,8,64], index: 15, kind: output, shape index: {}]  }
   0x1   :  { %3526 = sst [smem:[#allocation10_spill]] %s3510_s2 }
   0x2   :  { %3527 = sst [smem:[#allocation11_spill]] %s3511_s3 }
   0x3   :  { %3528 = sst [smem:[#allocation12_spill]] %s3512_s4 }
   0x4   :  { %3529 = sst [smem:[#allocation13_spill]] %s3521_s13 }
   0x5   :  { %3530 = sst [smem:[#allocation14_spill]] %s3522_s14 }
   0x6   :  { %3531 = sst [smem:[#allocation15_spill]] %s3523_s15 }
   0x7   :  { %20 = vsyncpa [#allocation4], 0  ;;  %s3084_s18 = smov 0   ;;  %s3086_s19 = smov 0  }
   0x8   :  { %s3088_s20 = smov 0  }
   0x9 LB: > { %3532 = sst [smem:[#allocation6_spill]] %s2985_s19  ;;  %s35_s22 = sadd.s32 1, %s2985_s19  ;;  %s2989_s20 = sphi %s3088_s20, %s26_s20   ;;  %s2985_s19 = sphi %s3086_s19, %s3555_s19   ;;  %s2981_s18 = sphi %s3084_s18, %s3554_s18  }
   0xa   : > { %3533 = sst [smem:[#allocation7_spill]] %s2989_s20  ;;  %p36_p0 = scmp.ge.s32.totalorder %s35_s22, 2 }
   0xb   : > { %p2524_p1 = scmp.ge.s32.totalorder %s2989_s20, 1  ;;  %p557_p2 = scmp.lt.s32.totalorder %s2989_s20, 3 }
   0xc   : > { %s3557_s22 = smov (%p36_p0, %s35_s22), 0 }
   0xd   : > { %3534 = sst [smem:[#allocation8_spill]] %s3557_s22  ;;  %p558_p3 = pnand %p2524_p1, %p557_p2 }
   0xf   : > { %561 = sbr.rel (%p558_p3) target bundleno = 4371 (0x1113), region = 80 }
  0x14   : > { %p652_p4 = scmp.lt.s32.totalorder %s2981_s18, 1  ;;  %s3536_s3 = sld [smem:[#allocation11_spill]] }
  0x15   : > { %s3537_s4 = sld [smem:[#allocation12_spill]]  ;;  %p2535_p5 = scmp.ne.s32.totalorder %s2981_s18, 0 }
  0x16   : > { %s3107_s23 = scalar_select %p652_p4, %s2981_s18, 1 }
  0x18   : > { %s2614_s30 = sshll.u32 %s3107_s23, 6  ;;  %s2527_s16 = sshll.u32 %s3107_s23, 1 }
  0x19   : > { %s2615_s15 = sshll.u32 %s3107_s23, 5  ;;  %s680_s22 = scalar_lea.vmem %s3516_s8, %s3107_s23 }
  0x1a   : > { %s3122_s24 = scalar_lea.vmem %s3536_s3, %s2614_s30  ;;  %s3137_s28 = scalar_lea.vmem %s3513_s5, %s2615_s15 }
  0x1b   : > { %s3127_s19 = scalar_lea.vmem %s3537_s4, %s2527_s16  ;;  %s3155_s26 = scalar_lea.vmem %s3518_s10, %s2527_s16 }
  0x1c   : > { %3538 = sst [smem:[#allocation9_spill]] %s3127_s19  ;;  %s3150_s19 = scalar_lea.vmem %s3517_s9, %s2614_s30 }
  0x1d   : > { %s2617_s13 = sshll.u32 %s3107_s23, 7  ;;  %s697_s3 = scalar_lea.vmem %s3520_s12, %s3107_s23 }
  0x1e   : > { %s3161_s2 = scalar_lea.vmem %s3519_s11, %s2617_s13  ;;  %703 = sbr.rel (%p2535_p5) target bundleno = 37 (0x25), region = 84 }
  0x23   : > { %v704_v0 = vld [vmem:[%s3508_s0] sm:$0xff]  ;;  %vm706_vm0 = vcmask 523264   ;;  %v705_v1 = vld [vmem:[%s3508_s0 + $0x8] sm:$0xff] }
  0x24   : > { %707 = vst.msk [vmem:[#allocation3] sm:$0xff] %vm706_vm0, %v704_v0  ;;  %708 = vst.msk [vmem:[#allocation3 + $0x8] sm:$0xff] %vm706_vm0, %v705_v1 }
  0x25 PF: > { %vm775_vm1 = vcmask 523264   ;;  %v2832_v16 = vld [vmem:[%s3122_s24 + $0x34] ss:$8 sps:$4 sm:$0xff]   ;;  %v2834_v17 = vld [vmem:[%s3122_s24 + $0x30] ss:$8 sps:$4 sm:$0xff]   ;;  %v2991_v20 = vmov 0   ;;  %s3539_s14 = scalar_lea.vmem %s3509_s1, %s3107_s23  ;;  %v821_v43 = vlaneseq }
  0x26   : > { %v2835_v18 = vld [vmem:[%s3122_s24 + $0x24] ss:$8 sps:$4 sm:$0xff]   ;;  %882 = vmatprep.subr.bf16.mxu1 %v2832_v16  ;;  %v2837_v19 = vld [vmem:[%s3122_s24 + $0x20] ss:$8 sps:$4 sm:$0xff]   ;;  %906 = vmatprep.mubr.bf16.mxu1 %v2991_v20  ;;  %v2838_v21 = vld [vmem:[%s3122_s24 + $0x14] ss:$8 sps:$4 sm:$0xff]  }
  0x27   : > { %883 = vmatpush1.bf16.msra.mxu1 %v2834_v17  ;;  %v2840_v22 = vld [vmem:[%s3122_s24 + $0x10] ss:$8 sps:$4 sm:$0xff]   ;;  %v2841_v23 = vld [vmem:[%s3122_s24 + $0x4] ss:$8 sps:$4 sm:$0xff]   ;;  %v2843_v24 = vld [vmem:[%s3122_s24] ss:$8 sps:$4 sm:$0xff]  }
  0x28   : > { %884 = vmatprep.subr.bf16.mxu1 %v2835_v18  ;;  %v2536_v33 = vld [vmem:[%s3539_s14] ss:$0 sm:$0xff]  ;;  %s3540_s20 = sld [smem:[#allocation9_spill]]  ;;  %v2992_v42 = vmov 0.0   ;;  %v3200_v44 = vshrl.u32 %v821_v43, 7  ;;  %vm2993_vm2 = vmmov 0  }
  0x29   : > { %s3541_s15 = sld [smem:[#allocation10_spill]]  ;;  %2693 = vmatprep.subr.bf16.mxu0 %v2992_v42  ;;  %2695 = vmatprep.mubr.msk.bf16.mxu0 %vm2993_vm2, %v2992_v42  ;;  %vm1065_vm3 = vcmask 1043456   ;;  %s2994_s29 = smov 64   ;;  %vm936_vm4 = vcmask 130048   ;;  %vm1037_vm6 = vcmask 64512   ;;  %vm1157_vm7 = vcmask 125952  }
  0x2a   : > { %v823_v45 = vsub.s32 0, %v3200_v44  ;;  %v827_v47 = vsub.s32 1, %v3200_v44  ;;  %s2995_s4 = smov 48   ;;  %s2996_s30 = smov 112   ;;  %vm1394_vm8 = vcmask 257152   ;;  %vm1631_vm9 = vcmask 388352  }
  0x2b   : > { %v709_v2 = vld [vmem:[#allocation3] sm:$0xff]  ;;  %v710_v3 = vld [vmem:[#allocation3 + $0x8] sm:$0xff]  ;;  %885 = vmatpush1.bf16.msra.mxu1 %v2837_v19  ;;  %s2997_s16 = smov 32   ;;  %s2998_s17 = smov 96   ;;  %vm1868_vm10 = vcmask 519552  }
  0x2c   : > { %v776_v4 = vsel %vm775_vm1, %v709_v2, 0.0  ;;  %v779_v5 = vsel %vm775_vm1, %v710_v3, 0.0  ;;  %886 = vmatprep.subr.bf16.mxu1 %v2838_v21  ;;  %s2999_s21 = smov 16   ;;  %s3000_s25 = smov 80  }
  0x2d   : > { %777 = vadd.xlane.f32.xlu0 %v776_v4  ;;  %v922_v4 = vand.u32 127, %v821_v43  ;;  %p2606_p6 = scmp.eq.s32.totalorder %s2981_s18, 1 }
  0x2e   : > { %v721_v46 = vld [vmem:[%s3540_s20] sm:$0x3]  ;;  %s3545_s20 = scalar_lea.vmem %s3514_s6, %s3107_s23 }
  0x2f   : > { %887 = vmatpush1.bf16.msra.mxu1 %v2840_v22  ;;  %s3542_s27 = scalar_lea.vmem %s3541_s15, %s3107_s23  ;;  %v824_v48 = vrot.slane %v721_v46, %v823_v45  ;;  %v828_v49 = vrot.slane %v721_v46, %v827_v47  ;;  %vm3242_vm5 = vcmp.le.s32.totalorder %v922_v4, %v3200_v44 }
  0x30   : > { %888 = vmatprep.subr.bf16.mxu1 %v2841_v23  ;;  %v2537_v37 = vld [vmem:[%s3542_s27] ss:$0 sm:$0xff] }
  0x31   : > { %780 = vadd.xlane.f32.xlu0 %v779_v5 }
  0x33   : > { %889 = vmatpush1.bf16.msra.mxu1 %v2843_v24 }
  0x34   : > { %2681 = vmatprep.subr.bf16.mxu1 %v2992_v42 }
  0xb6   : > { %v778_v6 = vpop.xlane.xlu0 %777 }
  0xb7   : > { %v783_v7 = vmul.f32 0.015625, %v778_v6 }
  0xb9   : > { %v785_v8 = vsub.f32 %v709_v2, %v783_v7 }
  0xba   : > { %v781_v9 = vpop.xlane.xlu0 %780 }
  0xbb   : > { %v784_v10 = vmul.f32 0.015625, %v781_v9  ;;  %v787_v11 = vmul.f32 %v785_v8, %v785_v8 }
  0xbd   : > { %v786_v12 = vsub.f32 %v710_v3, %v784_v10  ;;  %v789_v13 = vsel %vm775_vm1, %v787_v11, 0.0 }
  0xbe   : > { %790 = vadd.xlane.f32.xlu1 %v789_v13 }
  0xbf   : > { %v788_v14 = vmul.f32 %v786_v12, %v786_v12 }
  0xc1   : > { %v792_v15 = vsel %vm775_vm1, %v788_v14, 0.0 }
  0xc2   : > { %793 = vadd.xlane.f32.xlu1 %v792_v15 }
 0x147   : > { %v791_v25 = vpop.xlane.xlu1 %790 }
 0x148   : > { %v795_v26 = vmul.f32 0.015625, %v791_v25 }
 0x14a   : > { %v797_v27 = vadd.f32 1e-05, %v795_v26 }
 0x14b   : > { %v794_v28 = vpop.xlane.xlu1 %793 }
 0x14c   : > { %2877 = vrsqrt.f32 %v797_v27  ;;  %v796_v29 = vmul.f32 0.015625, %v794_v28 }
 0x14e   : > { %v798_v30 = vadd.f32 1e-05, %v796_v29 }
 0x150   : > { %2879 = vrsqrt.f32 %v798_v30 }
 0x159   : > { %v2878_v31 = vpop.eup %2877 }
 0x15a   : > { %v801_v32 = vmul.f32 %v2878_v31, %v785_v8 }
 0x15c   : > { %v809_v36 = vmul.f32 %v2536_v33, %v801_v32 }
 0x15d   : > { %v2880_v34 = vpop.eup %2879 }
 0x15e   : > { %v802_v35 = vmul.f32 %v2880_v34, %v786_v12  ;;  %v817_v39 = vadd.f32 %v2537_v37, %v809_v36 }
 0x160   : > { %v810_v38 = vmul.f32 %v2536_v33, %v802_v35 }
 0x162   : > { %v818_v40 = vadd.f32 %v2537_v37, %v810_v38 }
 0x164   : > { %v819_v41 = vpack.c.bf16 %v818_v40, %v817_v39 }
 0x166   : > { %2546 = vmatmul.mubr.msk.bf16.vlgmr.msra.gmra.mxu1 %vm775_vm1, %v819_v41 }
 0x167   : > { %2683 = vmatprep.mubr.msk.bf16.mxu1 %vm2993_vm2, %v2992_v42 }
 0x226   : > { %v908_v50 = vpop.f32.mrf.mxu1 }
 0x227   : > { %v909_v51 = vadd.f32 %v908_v50, %v824_v48 }
 0x228   : > { %v910_v52 = vpop.f32.mrf.mxu1 }
 0x229   : > { %v3213_v53 = vpack.c.bf16 %v909_v51, %v909_v51  ;;  %v911_v54 = vadd.f32 %v910_v52, %v828_v49 }
 0x22a   : > { %v912_v55 = vpop.f32.mrf.mxu1 }
 0x22b   : > { %v3215_v56 = vpack.c.bf16 %v911_v54, %v911_v54  ;;  %v913_v57 = vadd.f32 %v912_v55, %v824_v48  ;;  %934 = vrot.lane.b32.xlu0 %v3213_v53, %s2994_s29 }
 0x22c   : > { %v914_v62 = vpop.f32.mrf.mxu1 }
 0x22d   : > { %v3218_v58 = vpack.c.bf16 %v913_v57, %v913_v57  ;;  %v1067_v59 = vsel %vm1065_vm3, %v3215_v56, 0  ;;  %v915_v0 = vadd.f32 %v914_v62, %v828_v49 }
 0x22e   : > { %2694 = vmatpush3.bf16.msra.mxu0 %v1067_v59 }
 0x22f   : > { %983 = vrot.lane.b32.xlu1 %v3218_v58, %s2994_s29  ;;  %2705 = vmatprep.subr.bf16.mxu0 %v2992_v42  ;;  %v3232_v2 = vpack.c.bf16 %v915_v0, %v915_v0 }
 0x231   : > { %v1113_v3 = vsel %vm1065_vm3, %v3232_v2, 0 }
 0x29d   : > { %v935_v60 = vpop.permute.xlu0 %934 }
 0x29e   : > { %v941_v61 = vsel %vm936_vm4, %v935_v60, 0 }
 0x29f   : > { %2682 = vmatpush3.bf16.xpose.msra.mxu1 %v941_v61 }
 0x2a0   : > { %2687 = vmatprep.subr.bf16.mxu1 %v2992_v42 }
 0x2a1   : > { %v984_v63 = vpop.permute.xlu1 %983 }
 0x2a2   : > { %v989_v1 = vsel %vm936_vm4, %v984_v63, 0 }
 0x2a6   : > { %2684 = vmatmul.mubr.msk.bf16.vlgmr.msra.gmra.mxu1 %vm936_vm4, %v3213_v53 }
 0x2a7   : > { %2688 = vmatpush3.bf16.xpose.msra.mxu1 %v989_v1  ;;  %2689 = vmatprep.mubr.msk.bf16.mxu1 %vm2993_vm2, %v2992_v42 }
 0x2a8   : > { %2699 = vmatprep.subr.bf16.mxu1 %v2992_v42 }
 0x2ae   : > { %2690 = vmatmul.mubr.msk.bf16.vlgmr.msra.gmra.mxu1 %vm936_vm4, %v3218_v58 }
 0x2af   : > { %2700 = vmatpush3.bf16.msra.mxu1 %v1113_v3  ;;  %2701 = vmatprep.mubr.msk.bf16.mxu1 %vm2993_vm2, %v2992_v42 }
 0x2b0   : > { %2711 = vmatprep.subr.bf16.mxu1 %v2992_v42 }
 0x366   : > { %v977_v6 = vpop.f32.mrf.mxu1 }
 0x367   : > { %v1031_v7 = vmul.f32 0.25, %v977_v6 }
 0x368   : > { %v2685_v8 = vpop.f32.mrf.mxu1 }
 0x369   : > { %v1035_v9 = vsel %vm3242_vm5, %v1031_v7, -1e+30 }
 0x36a   : > { %v980_v10 = vpop.f32.mrf.mxu1  ;;  %v1038_v11 = vsel %vm1037_vm6, %v1035_v9, -inf }
 0x36b   : > { %1039 = vmax.xlane.f32.xlu1 %v1038_v11 }
 0x36c   : > { %v2686_v12 = vpop.f32.mrf.mxu1 }
 0x36e   : > { %v1025_v13 = vpop.f32.mrf.mxu1 }
 0x36f   : > { %v1032_v14 = vmul.f32 0.25, %v1025_v13 }
 0x370   : > { %v2691_v15 = vpop.f32.mrf.mxu1 }
 0x371   : > { %v1036_v16 = vsel %vm3242_vm5, %v1032_v14, -1e+30 }
 0x372   : > { %v1028_v17 = vpop.f32.mrf.mxu1  ;;  %v1041_v18 = vsel %vm1037_vm6, %v1036_v16, -inf }
 0x373   : > { %1042 = vmax.xlane.f32.xlu0 %v1041_v18 }
 0x374   : > { %v2692_v19 = vpop.f32.mrf.mxu1 }
 0x37c   : > { %1212 = vrot.lane.b32.xlu1 %v3218_v58, %s2995_s4 }
 0x3f4   : > { %v1040_v21 = vpop.xlane.xlu1 %1039 }
 0x3f5   : > { %v1044_v22 = vsub.f32 %v1035_v9, %v1040_v21 }
 0x3f7   : > { %v1046_v23 = vmul.f32 1.442695, %v1044_v22 }
 0x3f8   : > { %v1213_v32 = vpop.permute.xlu1 %1212 }
 0x3f9   : > { %2881 = vpow2.f32 %v1046_v23  ;;  %v1218_v46 = vsel %vm936_vm4, %v1213_v32, 0 }
 0x3fc   : > { %v1043_v24 = vpop.xlane.xlu0 %1042 }
 0x3fd   : > { %v1045_v25 = vsub.f32 %v1036_v16, %v1043_v24 }
 0x3ff   : > { %v1048_v26 = vmul.f32 1.442695, %v1045_v25 }
 0x401   : > { %2883 = vpow2.f32 %v1048_v26 }
 0x406   : > { %v2882_v27 = vpop.eup %2881 }
 0x407   : > { %v1050_v28 = vsel %vm1037_vm6, %v2882_v27, 0.0 }
 0x408   : > { %1051 = vadd.xlane.f32.xlu0 %v1050_v28 }
 0x40e   : > { %v2884_v29 = vpop.eup %2883 }
 0x40f   : > { %v1053_v30 = vsel %vm1037_vm6, %v2884_v29, 0.0 }
 0x410   : > { %1054 = vadd.xlane.f32.xlu1 %v1053_v30 }
 0x41e   : > { %1162 = vrot.lane.b32.xlu0 %v3213_v53, %s2995_s4 }
 0x421   : > { %1160 = vrot.lane.b32.xlu1 %v3213_v53, %s2996_s30 }
 0x425   : > { %1210 = vrot.lane.b32.xlu1 %v3218_v58, %s2996_s30 }
 0x491   : > { %v1052_v31 = vpop.xlane.xlu0 %1051 }
 0x492   : > { %2885 = vrcp.f32 %v1052_v31 }
 0x495   : > { %v1163_v36 = vpop.permute.xlu0 %1162 }
 0x496   : > { %v1168_v38 = vsel %vm936_vm4, %v1163_v36, 0 }
 0x499   : > { %v1055_v33 = vpop.xlane.xlu1 %1054 }
 0x49a   : > { %2887 = vrcp.f32 %v1055_v33 }
 0x49d   : > { %v1161_v43 = vpop.permute.xlu1 %1160 }
 0x49f   : > { %v2886_v34 = vpop.eup %2885 }
 0x4a0   : > { %v1057_v35 = vmul.f32 %v2886_v34, %v2882_v27 }
 0x4a1   : > { %v1211_v48 = vpop.permute.xlu1 %1210 }
 0x4a2   : > { %v1060_v37 = vpack.c.bf16 %v1057_v35, %v1057_v35 }
 0x4a4   : > { %2696 = vmatmul.mubr.msk.bf16.vlgmr.msra.gmra.mxu0 %vm1037_vm6, %v1060_v37 }
 0x4a5   : > { %2706 = vmatpush3.bf16.xpose.msra.mxu0 %v1168_v38  ;;  %2707 = vmatprep.mubr.msk.bf16.mxu0 %vm2993_vm2, %v2992_v42 }
 0x4a6   : > { %2717 = vmatprep.subr.bf16.mxu0 %v2992_v42 }
 0x4a7   : > { %v2888_v39 = vpop.eup %2887 }
 0x4a8   : > { %v1059_v40 = vmul.f32 %v2888_v39, %v2884_v29 }
 0x4aa   : > { %v1061_v41 = vpack.c.bf16 %v1059_v40, %v1059_v40 }
 0x4ac   : > { %2702 = vmatmul.mubr.msk.bf16.vlgmr.msra.gmra.mxu1 %vm1037_vm6, %v1061_v41  ;;  %2708 = vmatmul.mubr.msk.bf16.vlgmr.msra.gmra.mxu0 %vm936_vm4, %v1161_v43 }
 0x4ad   : > { %2712 = vmatpush3.bf16.xpose.msra.mxu1 %v1218_v46  ;;  %2713 = vmatprep.mubr.msk.bf16.mxu1 %vm2993_vm2, %v2992_v42 }
 0x4ae   : > { %2723 = vmatprep.subr.bf16.mxu1 %v2992_v42  ;;  %2719 = vmatprep.mubr.msk.bf16.mxu0 %vm2993_vm2, %v2992_v42 }
 0x4b4   : > { %2714 = vmatmul.mubr.msk.bf16.vlgmr.msra.gmra.mxu1 %vm936_vm4, %v1211_v48 }
 0x4b5   : > { %2725 = vmatprep.mubr.msk.bf16.mxu1 %vm2993_vm2, %v2992_v42 }
 0x564   : > { %v1103_v49 = vpop.f32.mrf.mxu0 }
 0x565   : > { %v1155_v50 = vpack.c.bf16 %v1103_v49, %v1103_v49 }
 0x566   : > { %v2697_v51 = vpop.f32.mrf.mxu0 }
 0x567   : > { %1158 = vst.msk [vmem:[#allocation2] sm:$0xf] %vm1157_vm7, %v1155_v50 }
 0x568   : > { %v1106_v52 = vpop.f32.mrf.mxu0 }
 0x56a   : > { %v2698_v54 = vpop.f32.mrf.mxu0 }
 0x56c   : > { %v1149_v55 = vpop.f32.mrf.mxu1  ;;  %v1204_v57 = vpop.f32.mrf.mxu0 }
 0x56d   : > { %v1156_v59 = vpack.c.bf16 %v1149_v55, %v1149_v55  ;;  %v1260_v60 = vmul.f32 0.25, %v1204_v57 }
 0x56e   : > { %v2703_v61 = vpop.f32.mrf.mxu1  ;;  %v2709_v62 = vpop.f32.mrf.mxu0 }
 0x56f   : > { %1159 = vst.msk [vmem:[#allocation2 + $0x4] sm:$0xf] %vm1157_vm7, %v1156_v59  ;;  %v1262_v63 = vsel %vm3242_vm5, %v1260_v60, -1e+30 }
 0x570   : > { %v1152_v0 = vpop.f32.mrf.mxu1  ;;  %v1207_v1 = vpop.f32.mrf.mxu0  ;;  %v1264_v3 = vsel %vm1037_vm6, %v1262_v63, -inf }
 0x571   : > { %1265 = vmax.xlane.f32.xlu0 %v1264_v3 }
 0x572   : > { %v2704_v4 = vpop.f32.mrf.mxu1  ;;  %v2710_v6 = vpop.f32.mrf.mxu0 }
 0x574   : > { %v1254_v7 = vpop.f32.mrf.mxu1 }
 0x575   : > { %v1261_v8 = vmul.f32 0.25, %v1254_v7 }
 0x576   : > { %v2715_v9 = vpop.f32.mrf.mxu1 }
 0x577   : > { %v1263_v10 = vsel %vm3242_vm5, %v1261_v8, -1e+30 }
 0x578   : > { %v1257_v11 = vpop.f32.mrf.mxu1  ;;  %v1267_v12 = vsel %vm1037_vm6, %v1263_v10, -inf }
 0x579   : > { %1268 = vmax.xlane.f32.xlu1 %v1267_v12 }
 0x57a   : > { %v2716_v13 = vpop.f32.mrf.mxu1 }
 0x58a   : > { %1336 = vrot.lane.b32.xlu1 %v3232_v2, %s2996_s30 }
 0x58e   : > { %1399 = vrot.lane.b32.xlu1 %v3213_v53, %s2997_s16 }
 0x592   : > { %1449 = vrot.lane.b32.xlu1 %v3218_v58, %s2997_s16 }
 0x596   : > { %1447 = vrot.lane.b32.xlu1 %v3218_v58, %s2998_s17 }
 0x5fa   : > { %v1266_v14 = vpop.xlane.xlu0 %1265 }
 0x5fb   : > { %v1270_v15 = vsub.f32 %v1262_v63, %v1266_v14 }
 0x5fd   : > { %v1272_v16 = vmul.f32 1.442695, %v1270_v15 }
 0x5ff   : > { %2889 = vpow2.f32 %v1272_v16 }
 0x602   : > { %v1269_v17 = vpop.xlane.xlu1 %1268 }
 0x603   : > { %v1271_v18 = vsub.f32 %v1263_v10, %v1269_v17 }
 0x605   : > { %v1274_v19 = vmul.f32 1.442695, %v1271_v18 }
 0x606   : > { %v1337_v21 = vpop.permute.xlu1 %1336 }
 0x607   : > { %2891 = vpow2.f32 %v1274_v19  ;;  %v1342_v22 = vsel %vm1065_vm3, %v1337_v21, 0 }
 0x608   : > { %2724 = vmatpush3.bf16.msra.mxu1 %v1342_v22 }
 0x609   : > { %2735 = vmatprep.subr.bf16.mxu1 %v2992_v42 }
 0x60a   : > { %v1400_v33 = vpop.permute.xlu1 %1399 }
 0x60b   : > { %v1405_v35 = vsel %vm936_vm4, %v1400_v33, 0 }
 0x60c   : > { %v2890_v23 = vpop.eup %2889 }
 0x60d   : > { %v1276_v24 = vsel %vm1037_vm6, %v2890_v23, 0.0 }
 0x60e   : > { %1277 = vadd.xlane.f32.xlu0 %v1276_v24  ;;  %v1450_v38 = vpop.permute.xlu1 %1449 }
 0x60f   : > { %v1455_v41 = vsel %vm936_vm4, %v1450_v38, 0 }
 0x612   : > { %v1448_v43 = vpop.permute.xlu1 %1447 }
 0x614   : > { %v2892_v25 = vpop.eup %2891 }
 0x615   : > { %v1279_v26 = vsel %vm1037_vm6, %v2892_v25, 0.0 }
 0x616   : > { %1280 = vadd.xlane.f32.xlu0 %v1279_v26 }
 0x62c   : > { %1288 = vrot.lane.b32.xlu0 %v3215_v56, %s2996_s30 }
 0x630   : > { %1397 = vrot.lane.b32.xlu0 %v3213_v53, %s2998_s17 }
 0x697   : > { %v1278_v27 = vpop.xlane.xlu0 %1277 }
 0x698   : > { %2893 = vrcp.f32 %v1278_v27 }
 0x69f   : > { %v1281_v28 = vpop.xlane.xlu0 %1280 }
 0x6a0   : > { %2895 = vrcp.f32 %v1281_v28 }
 0x6a3   : > { %v1289_v29 = vpop.permute.xlu0 %1288 }
 0x6a4   : > { %v1294_v30 = vsel %vm1065_vm3, %v1289_v29, 0 }
 0x6a5   : > { %v2894_v31 = vpop.eup %2893  ;;  %2718 = vmatpush3.bf16.msra.mxu0 %v1294_v30 }
 0x6a6   : > { %2729 = vmatprep.subr.bf16.mxu0 %v2992_v42  ;;  %v1283_v32 = vmul.f32 %v2894_v31, %v2890_v23 }
 0x6a7   : > { %v1398_v40 = vpop.permute.xlu0 %1397 }
 0x6a8   : > { %v1286_v34 = vpack.c.bf16 %v1283_v32, %v1283_v32 }
 0x6aa   : > { %2720 = vmatmul.mubr.msk.bf16.vlgmr.msra.gmra.mxu0 %vm1037_vm6, %v1286_v34 }
 0x6ab   : > { %2730 = vmatpush3.bf16.xpose.msra.mxu0 %v1405_v35  ;;  %2731 = vmatprep.mubr.msk.bf16.mxu0 %vm2993_vm2, %v2992_v42 }
 0x6ac   : > { %2741 = vmatprep.subr.bf16.mxu0 %v2992_v42 }
 0x6ad   : > { %v2896_v36 = vpop.eup %2895 }
 0x6ae   : > { %v1285_v37 = vmul.f32 %v2896_v36, %v2892_v25 }
 0x6b0   : > { %v1287_v39 = vpack.c.bf16 %v1285_v37, %v1285_v37 }
 0x6b2   : > { %2726 = vmatmul.mubr.msk.bf16.vlgmr.msra.gmra.mxu1 %vm1037_vm6, %v1287_v39  ;;  %2732 = vmatmul.mubr.msk.bf16.vlgmr.msra.gmra.mxu0 %vm936_vm4, %v1398_v40 }
 0x6b3   : > { %2736 = vmatpush3.bf16.xpose.msra.mxu1 %v1455_v41  ;;  %2737 = vmatprep.mubr.msk.bf16.mxu1 %vm2993_vm2, %v2992_v42 }
 0x6b4   : > { %2747 = vmatprep.subr.bf16.mxu1 %v2992_v42  ;;  %2743 = vmatprep.mubr.msk.bf16.mxu0 %vm2993_vm2, %v2992_v42 }
 0x6ba   : > { %2738 = vmatmul.mubr.msk.bf16.vlgmr.msra.gmra.mxu1 %vm936_vm4, %v1448_v43 }
 0x6bb   : > { %2749 = vmatprep.mubr.msk.bf16.mxu1 %vm2993_vm2, %v2992_v42 }
 0x76a   : > { %v3318_v46 = vpop.f32.mrf.mxu0 }
 0x76c   : > { %v2721_v48 = vpop.f32.mrf.mxu0 }
 0x76e   : > { %v1333_v49 = vpop.f32.mrf.mxu0 }
 0x770   : > { %v2722_v50 = vpop.f32.mrf.mxu0 }
 0x772   : > { %v3320_v51 = vpop.f32.mrf.mxu1  ;;  %v1441_v52 = vpop.f32.mrf.mxu0 }
 0x773   : > { %v1497_v54 = vmul.f32 0.25, %v1441_v52 }
 0x774   : > { %v2727_v55 = vpop.f32.mrf.mxu1  ;;  %v2733_v57 = vpop.f32.mrf.mxu0 }
 0x775   : > { %v1499_v59 = vsel %vm3242_vm5, %v1497_v54, -1e+30 }
 0x776   : > { %v1381_v60 = vpop.f32.mrf.mxu1  ;;  %v1444_v61 = vpop.f32.mrf.mxu0  ;;  %v1501_v62 = vsel %vm1037_vm6, %v1499_v59, -inf }
 0x777   : > { %1502 = vmax.xlane.f32.xlu0 %v1501_v62 }
 0x778   : > { %v2728_v63 = vpop.f32.mrf.mxu1  ;;  %v2734_v0 = vpop.f32.mrf.mxu0 }
 0x77a   : > { %v1491_v1 = vpop.f32.mrf.mxu1 }
 0x77b   : > { %v1498_v3 = vmul.f32 0.25, %v1491_v1 }
 0x77c   : > { %v2739_v4 = vpop.f32.mrf.mxu1 }
 0x77d   : > { %v1500_v6 = vsel %vm3242_vm5, %v1498_v3, -1e+30 }
 0x77e   : > { %v1494_v7 = vpop.f32.mrf.mxu1  ;;  %v1504_v8 = vsel %vm1037_vm6, %v1500_v6, -inf }
 0x77f   : > { %1505 = vmax.xlane.f32.xlu1 %v1504_v8  ;;  %v1385_v7 = vpack.c.bf16 %v3320_v51, %v3320_v51 }
 0x780   : > { %v2740_v9 = vpop.f32.mrf.mxu1 }
 0x790   : > { %1573 = vrot.lane.b32.xlu1 %v3232_v2, %s2998_s17 }
 0x794   : > { %1636 = vrot.lane.b32.xlu1 %v3213_v53, %s2999_s21 }
 0x798   : > { %1686 = vrot.lane.b32.xlu1 %v3218_v58, %s2999_s21 }
 0x79c   : > { %1684 = vrot.lane.b32.xlu1 %v3218_v58, %s3000_s25 }
 0x800   : > { %v1503_v10 = vpop.xlane.xlu0 %1502 }
 0x801   : > { %v1507_v11 = vsub.f32 %v1499_v59, %v1503_v10 }
 0x803   : > { %v1509_v12 = vmul.f32 1.442695, %v1507_v11 }
 0x805   : > { %2897 = vpow2.f32 %v1509_v12 }
 0x808   : > { %v1506_v13 = vpop.xlane.xlu1 %1505 }
 0x809   : > { %v1508_v14 = vsub.f32 %v1500_v6, %v1506_v13  ;;  %v1384_v6 = vpack.c.bf16 %v3318_v46, %v3318_v46 }
 0x80b   : > { %v1511_v15 = vmul.f32 1.442695, %v1508_v14 }
 0x80c   : > { %v1574_v16 = vpop.permute.xlu1 %1573 }
 0x80d   : > { %2899 = vpow2.f32 %v1511_v15  ;;  %v1579_v17 = vsel %vm1065_vm3, %v1574_v16, 0 }
 0x80e   : > { %2748 = vmatpush3.bf16.msra.mxu1 %v1579_v17 }
 0x80f   : > { %2759 = vmatprep.subr.bf16.mxu1 %v2992_v42 }
 0x810   : > { %v1637_v28 = vpop.permute.xlu1 %1636 }
 0x811   : > { %v1642_v30 = vsel %vm936_vm4, %v1637_v28, 0 }
 0x812   : > { %v2898_v18 = vpop.eup %2897 }
 0x813   : > { %v1513_v19 = vsel %vm1037_vm6, %v2898_v18, 0.0 }
 0x814   : > { %1514 = vadd.xlane.f32.xlu0 %v1513_v19  ;;  %v1687_v32 = vpop.permute.xlu1 %1686 }
 0x815   : > { %v1692_v35 = vsel %vm936_vm4, %v1687_v32, 0  ;;  %v2846_v32 = vld [vmem:[%s3137_s28 + $0x8] sm:$0xff]  }
 0x818   : > { %v1685_v36 = vpop.permute.xlu1 %1684 }
 0x81a   : > { %v2900_v21 = vpop.eup %2899 }
 0x81b   : > { %v1516_v58 = vsel %vm1037_vm6, %v2900_v21, 0.0 }
 0x81c   : > { %1517 = vadd.xlane.f32.xlu0 %v1516_v58 }
 0x832   : > { %1525 = vrot.lane.b32.xlu0 %v3215_v56, %s2998_s17 }
 0x836   : > { %1634 = vrot.lane.b32.xlu0 %v3213_v53, %s3000_s25 }
 0x89d   : > { %v1515_v22 = vpop.xlane.xlu0 %1514 }
 0x89e   : > { %2901 = vrcp.f32 %v1515_v22 }
 0x8a5   : > { %v1518_v23 = vpop.xlane.xlu0 %1517 }
 0x8a6   : > { %2903 = vrcp.f32 %v1518_v23 }
 0x8a9   : > { %v1526_v24 = vpop.permute.xlu0 %1525 }
 0x8aa   : > { %v1531_v25 = vsel %vm1065_vm3, %v1526_v24, 0 }
 0x8ab   : > { %v2902_v26 = vpop.eup %2901  ;;  %2742 = vmatpush3.bf16.msra.mxu0 %v1531_v25 }
 0x8ac   : > { %2753 = vmatprep.subr.bf16.mxu0 %v2992_v42  ;;  %v1520_v27 = vmul.f32 %v2902_v26, %v2898_v18 }
 0x8ad   : > { %v1635_v34 = vpop.permute.xlu0 %1634 }
 0x8ae   : > { %v1523_v29 = vpack.c.bf16 %v1520_v27, %v1520_v27 }
 0x8b0   : > { %2744 = vmatmul.mubr.msk.bf16.vlgmr.msra.gmra.mxu0 %vm1037_vm6, %v1523_v29 }
 0x8b1   : > { %2754 = vmatpush3.bf16.xpose.msra.mxu0 %v1642_v30  ;;  %2755 = vmatprep.mubr.msk.bf16.mxu0 %vm2993_vm2, %v2992_v42 }
 0x8b2   : > { %2765 = vmatprep.subr.bf16.mxu0 %v2992_v42 }
 0x8b3   : > { %v2904_v53 = vpop.eup %2903 }
 0x8b4   : > { %v1522_v31 = vmul.f32 %v2904_v53, %v2900_v21  ;;  %v2844_v53 = vld [vmem:[%s3137_s28 + $0x18] sm:$0xff]  }
 0x8b6   : > { %v1524_v33 = vpack.c.bf16 %v1522_v31, %v1522_v31  ;;  %v2845_v31 = vld [vmem:[%s3137_s28 + $0x10] sm:$0xff]  }
 0x8b8   : > { %2750 = vmatmul.mubr.msk.bf16.vlgmr.msra.gmra.mxu1 %vm1037_vm6, %v1524_v33  ;;  %2756 = vmatmul.mubr.msk.bf16.vlgmr.msra.gmra.mxu0 %vm936_vm4, %v1635_v34  ;;  %v2847_v34 = vld [vmem:[%s3137_s28] sm:$0xff]  }
 0x8b9   : > { %2760 = vmatpush3.bf16.xpose.msra.mxu1 %v1692_v35  ;;  %2761 = vmatprep.mubr.msk.bf16.mxu1 %vm2993_vm2, %v2992_v42 }
 0x8ba   : > { %2771 = vmatprep.subr.bf16.mxu1 %v2992_v42  ;;  %2767 = vmatprep.mubr.msk.bf16.mxu0 %vm2993_vm2, %v2992_v42 }
 0x8c0   : > { %2762 = vmatmul.mubr.msk.bf16.vlgmr.msra.gmra.mxu1 %vm936_vm4, %v1685_v36 }
 0x8c1   : > { %2773 = vmatprep.mubr.msk.bf16.mxu1 %vm2993_vm2, %v2992_v42 }
 0x970   : > { %v1567_v37 = vpop.f32.mrf.mxu0 }
 0x971   : > { %v1621_v21 = vpack.c.bf16 %v1567_v37, %v1567_v37 }
 0x972   : > { %v2745_v38 = vpop.f32.mrf.mxu0 }
 0x974   : > { %v1570_v39 = vpop.f32.mrf.mxu0 }
 0x976   : > { %v2746_v40 = vpop.f32.mrf.mxu0 }
 0x978   : > { %v1615_v41 = vpop.f32.mrf.mxu1  ;;  %v1678_v43 = vpop.f32.mrf.mxu0 }
 0x979   : > { %v1734_v48 = vmul.f32 0.25, %v1678_v43  ;;  %v1622_v5 = vpack.c.bf16 %v1615_v41, %v1615_v41 }
 0x97a   : > { %v2751_v49 = vpop.f32.mrf.mxu1  ;;  %v2757_v50 = vpop.f32.mrf.mxu0 }
 0x97b   : > { %v1736_v52 = vsel %vm3242_vm5, %v1734_v48, -1e+30  ;;  %v2567_v50 = vld [vmem:[%s3545_s20] ss:$0 sm:$0xff] }
 0x97c   : > { %v1618_v54 = vpop.f32.mrf.mxu1  ;;  %v1681_v55 = vpop.f32.mrf.mxu0  ;;  %v1738_v57 = vsel %vm1037_vm6, %v1736_v52, -inf }
 0x97d   : > { %1739 = vmax.xlane.f32.xlu0 %v1738_v57  ;;  %v2933_v57 = vld [vmem:[#allocation3] sm:$0xff] }
 0x97e   : > { %v2752_v59 = vpop.f32.mrf.mxu1  ;;  %v2758_v60 = vpop.f32.mrf.mxu0 }
 0x980   : > { %v1728_v61 = vpop.f32.mrf.mxu1 }
 0x981   : > { %v1735_v62 = vmul.f32 0.25, %v1728_v61 }
 0x982   : > { %v2763_v63 = vpop.f32.mrf.mxu1 }
 0x983   : > { %v1737_v0 = vsel %vm3242_vm5, %v1735_v62, -1e+30 }
 0x984   : > { %v1731_v1 = vpop.f32.mrf.mxu1  ;;  %v1741_v3 = vsel %vm1037_vm6, %v1737_v0, -inf }
 0x985   : > { %1742 = vmax.xlane.f32.xlu1 %v1741_v3 }
 0x986   : > { %v2764_v4 = vpop.f32.mrf.mxu1 }
 0x996   : > { %1810 = vrot.lane.b32.xlu1 %v3232_v2, %s3000_s25 }
 0x99a   : > { %1388 = vrot.lane.b32.xlu1 %v1384_v6, %s2999_s21 }
 0x99e   : > { %1390 = vrot.lane.b32.xlu1 %v1385_v7, %s2999_s21 }
 0x9a2   : > { %1627 = vrot.lane.b32.xlu1 %v1622_v5, %s2997_s16 }
 0xa06   : > { %v1740_v8 = vpop.xlane.xlu0 %1739 }
 0xa07   : > { %v1744_v9 = vsub.f32 %v1736_v52, %v1740_v8 }
 0xa09   : > { %v1746_v10 = vmul.f32 1.442695, %v1744_v9 }
 0xa0b   : > { %2905 = vpow2.f32 %v1746_v10 }
 0xa0e   : > { %v1743_v11 = vpop.xlane.xlu1 %1742 }
 0xa0f   : > { %v1745_v12 = vsub.f32 %v1737_v0, %v1743_v11  ;;  %v2934_v0 = vld [vmem:[#allocation3 + $0x8] sm:$0xff] }
 0xa11   : > { %v1748_v2 = vmul.f32 1.442695, %v1745_v12 }
 0xa12   : > { %v1811_v13 = vpop.permute.xlu1 %1810 }
 0xa13   : > { %2907 = vpow2.f32 %v1748_v2  ;;  %v1816_v46 = vsel %vm1065_vm3, %v1811_v13, 0  ;;  %v2851_v13 = vld [vmem:[%s3150_s19 + $0x34] ss:$8 sps:$4 sm:$0xff]  }
 0xa14   : > { %2772 = vmatpush3.bf16.msra.mxu1 %v1816_v46  ;;  %v2849_v46 = vld [vmem:[%s3150_s19 + $0x30] ss:$8 sps:$4 sm:$0xff]  }
 0xa15   : > { %2059 = vmatprep.subr.bf16.mxu1 %v2851_v13 }
 0xa16   : > { %v1389_v14 = vpop.permute.xlu1 %1388 }
 0xa17   : > { %1395 = vst.msk [vmem:[#allocation2] sm:$0xf] %vm1394_vm8, %v1389_v14  ;;  %v2854_v14 = vld [vmem:[%s3150_s19 + $0x24] ss:$8 sps:$4 sm:$0xff]  }
 0xa18   : > { %v2906_v51 = vpop.eup %2905 }
 0xa19   : > { %v1750_v15 = vsel %vm1037_vm6, %v2906_v51, 0.0 }
 0xa1a   : > { %1751 = vadd.xlane.f32.xlu0 %v1750_v15  ;;  %v1391_v16 = vpop.permute.xlu1 %1390  ;;  %v2857_v15 = vld [vmem:[%s3150_s19 + $0x14] ss:$8 sps:$4 sm:$0xff]  }
 0xa1b   : > { %1396 = vst.msk [vmem:[#allocation2 + $0x4] sm:$0xf] %vm1394_vm8, %v1391_v16  ;;  %v2855_v16 = vld [vmem:[%s3150_s19 + $0x10] ss:$8 sps:$4 sm:$0xff]  }
 0xa1e   : > { %v1628_v17 = vpop.permute.xlu1 %1627 }
 0xa1f   : > { %1633 = vst.msk [vmem:[#allocation2 + $0x4] sm:$0xf] %vm1631_vm9, %v1628_v17  ;;  %v2860_v17 = vld [vmem:[%s3150_s19 + $0x4] ss:$8 sps:$4 sm:$0xff]  }
 0xa20   : > { %v2908_v18 = vpop.eup %2907 }
 0xa21   : > { %v1753_v19 = vsel %vm1037_vm6, %v2908_v18, 0.0 }
 0xa22   : > { %1754 = vadd.xlane.f32.xlu0 %v1753_v19 }
 0xa38   : > { %1762 = vrot.lane.b32.xlu0 %v3215_v56, %s3000_s25 }
 0xa3c   : > { %1625 = vrot.lane.b32.xlu0 %v1621_v21, %s2997_s16 }
 0xaa3   : > { %v1752_v58 = vpop.xlane.xlu0 %1751 }
 0xaa4   : > { %2909 = vrcp.f32 %v1752_v58 }
 0xaab   : > { %v1755_v22 = vpop.xlane.xlu0 %1754 }
 0xaac   : > { %2911 = vrcp.f32 %v1755_v22 }
 0xaaf   : > { %v1763_v23 = vpop.permute.xlu0 %1762 }
 0xab0   : > { %v1768_v24 = vsel %vm1065_vm3, %v1763_v23, 0 }
 0xab1   : > { %v2910_v25 = vpop.eup %2909  ;;  %2766 = vmatpush3.bf16.msra.mxu0 %v1768_v24 }
 0xab2   : > { %v1757_v26 = vmul.f32 %v2910_v25, %v2906_v51  ;;  %2777 = vmatprep.subr.bf16.mxu0 %v2992_v42  ;;  %v2852_v51 = vld [vmem:[%s3150_s19 + $0x20] ss:$8 sps:$4 sm:$0xff]  }
 0xab3   : > { %v1626_v27 = vpop.permute.xlu0 %1625 }
 0xab4   : > { %1632 = vst.msk [vmem:[#allocation2] sm:$0xf] %vm1631_vm9, %v1626_v27  ;;  %v1760_v56 = vpack.c.bf16 %v1757_v26, %v1757_v26 }
 0xab6   : > { %2768 = vmatmul.mubr.msk.bf16.vlgmr.msra.gmra.mxu0 %vm1037_vm6, %v1760_v56 }
 0xab7   : > { %2785 = vmatprep.mubr.msk.bf16.mxu0 %vm2993_vm2, %v2992_v42  ;;  %2778 = vmatpush3.bf16.msra.mxu0 %v2844_v53 }
 0xab8   : > { %2779 = vmatprep.subr.bf16.mxu0 %v2992_v42 }
 0xab9   : > { %v2912_v28 = vpop.eup %2911 }
 0xaba   : > { %v1759_v29 = vmul.f32 %v2912_v28, %v2908_v18  ;;  %v2858_v18 = vld [vmem:[%s3150_s19] ss:$8 sps:$4 sm:$0xff]   ;;  %s3546_s19 = scalar_lea.vmem %s3515_s7, %s3107_s23 }
 0xabb   : > { %2780 = vmatpush3.bf16.msra.mxu0 %v2845_v31  ;;  %v2574_v27 = vld [vmem:[%s3546_s19] ss:$0 sm:$0xff] }
 0xabc   : > { %v1761_v30 = vpack.c.bf16 %v1759_v29, %v1759_v29  ;;  %2781 = vmatprep.subr.bf16.mxu0 %v2992_v42 }
 0xabe   : > { %2774 = vmatmul.mubr.msk.bf16.vlgmr.msra.gmra.mxu1 %vm1037_vm6, %v1761_v30  ;;  %v2575_v30 = vld [vmem:[%s680_s22] ss:$0 sm:$0xff] }
 0xabf   : > { %2083 = vmatprep.mubr.bf16.mxu1 %v2991_v20  ;;  %2782 = vmatpush3.bf16.msra.mxu0 %v2846_v32 }
 0xac0   : > { %2783 = vmatprep.subr.bf16.mxu0 %v2992_v42  ;;  %2060 = vmatpush1.bf16.msra.mxu1 %v2849_v46 }
 0xac1   : > { %2061 = vmatprep.subr.bf16.mxu1 %v2854_v14 }
 0xac3   : > { %2784 = vmatpush3.bf16.msra.mxu0 %v2847_v34  ;;  %v2861_v34 = vld [vmem:[%s3161_s2 + $0x78] sm:$0xff]  }
 0xac4   : > { %2062 = vmatpush1.bf16.msra.mxu1 %v2852_v51  ;;  %2659 = vmatprep.subr.bf16.mxu0 %v2861_v34 }
 0xac5   : > { %2063 = vmatprep.subr.bf16.mxu1 %v2857_v15 }
 0xac8   : > { %2064 = vmatpush1.bf16.msra.mxu1 %v2855_v16 }
 0xac9   : > { %2065 = vmatprep.subr.bf16.mxu1 %v2860_v17 }
 0xacc   : > { %2066 = vmatpush1.bf16.msra.mxu1 %v2858_v18 }
 0xb76   : > { %v1804_v33 = vpop.f32.mrf.mxu0 }
 0xb77   : > { %v1858_v35 = vpack.c.bf16 %v1804_v33, %v1804_v33 }
 0xb78   : > { %v2769_v36 = vpop.f32.mrf.mxu0 }
 0xb79   : > { %1862 = vrot.lane.b32.xlu0 %v1858_v35, %s2995_s4  ;;  %v2862_v35 = vld [vmem:[%s3161_s2 + $0x38] sm:$0xff]   ;;  %v2863_v36 = vld [vmem:[%s3161_s2 + $0x70] sm:$0xff]  }
 0xb7a   : > { %v1807_v37 = vpop.f32.mrf.mxu0 }
 0xb7b   : > { %v2864_v37 = vld [vmem:[%s3161_s2 + $0x30] sm:$0xff]  }
 0xb7c   : > { %v2770_v20 = vpop.f32.mrf.mxu0 }
 0xb7d   : > { %v2865_v20 = vld [vmem:[%s3161_s2 + $0x68] sm:$0xff]  }
 0xb7e   : > { %v1852_v38 = vpop.f32.mrf.mxu1 }
 0xb7f   : > { %v1859_v39 = vpack.c.bf16 %v1852_v38, %v1852_v38  ;;  %v2866_v38 = vld [vmem:[%s3161_s2 + $0x28] sm:$0xff]  }
 0xb80   : > { %v2775_v40 = vpop.f32.mrf.mxu1 }
 0xb81   : > { %1864 = vrot.lane.b32.xlu1 %v1859_v39, %s2995_s4  ;;  %v2867_v39 = vld [vmem:[%s3161_s2 + $0x60] sm:$0xff]  }
 0xb82   : > { %v1855_v41 = vpop.f32.mrf.mxu1  ;;  %v2868_v40 = vld [vmem:[%s3161_s2 + $0x20] sm:$0xff]  }
 0xb83   : > { %v2869_v41 = vld [vmem:[%s3161_s2 + $0x58] sm:$0xff]  }
 0xb84   : > { %v2776_v43 = vpop.f32.mrf.mxu1 }
 0xb85   : > { %v2870_v43 = vld [vmem:[%s3161_s2 + $0x18] sm:$0xff]  }
 0xbeb   : > { %v1863_v48 = vpop.permute.xlu0 %1862 }
 0xbec   : > { %1869 = vst.msk [vmem:[#allocation2] sm:$0xf] %vm1868_vm10, %v1863_v48  ;;  %v2871_v48 = vld [vmem:[%s3161_s2 + $0x50] sm:$0xff]  }
 0xbf3   : > { %v1865_v49 = vpop.permute.xlu1 %1864 }
 0xbf4   : > { %1870 = vst.msk [vmem:[#allocation2 + $0x4] sm:$0xf] %vm1868_vm10, %v1865_v49  ;;  %v2872_v49 = vld [vmem:[%s3161_s2 + $0x10] sm:$0xff]  }
 0xbfb   : > { %v2848_v42 = vld [vmem:[#allocation2] sm:$0xff]  }
 0xbfc   : > { %2786 = vmatmul.mubr.msk.bf16.vlgmr.msra.gmra.mxu0 %vm775_vm1, %v2848_v42  ;;  %v2873_v42 = vld [vmem:[%s3161_s2 + $0x48] sm:$0xff]  }
 0xbfd   : > { %2660 = vmatpush3.bf16.msra.mxu0 %v2862_v35 }
 0xbfe   : > { %2661 = vmatprep.subr.bf16.mxu0 %v2863_v36 }
 0xc01   : > { %2662 = vmatpush3.bf16.msra.mxu0 %v2864_v37 }
 0xc02   : > { %2663 = vmatprep.subr.bf16.mxu0 %v2865_v20 }
 0xc05   : > { %2664 = vmatpush3.bf16.msra.mxu0 %v2866_v38 }
 0xc06   : > { %2665 = vmatprep.subr.bf16.mxu0 %v2867_v39 }
 0xc09   : > { %2666 = vmatpush3.bf16.msra.mxu0 %v2868_v40 }
 0xc0a   : > { %2667 = vmatprep.subr.bf16.mxu0 %v2869_v41 }
 0xc0d   : > { %2668 = vmatpush3.bf16.msra.mxu0 %v2870_v43 }
 0xc0e   : > { %2669 = vmatprep.subr.bf16.mxu0 %v2871_v48 }
 0xc11   : > { %2670 = vmatpush3.bf16.msra.mxu0 %v2872_v49 }
 0xc12   : > { %2671 = vmatprep.subr.bf16.mxu0 %v2873_v42 }
 0xcbc   : > { %v1945_v52 = vpop.f32.mrf.mxu0 }
 0xcbd   : > { %v1946_v54 = vadd.f32 %v2567_v50, %v1945_v52  ;;  %v2875_v52 = vld [vmem:[%s3161_s2 + $0x40] sm:$0xff]  }
 0xcbe   : > { %v2787_v55 = vpop.f32.mrf.mxu0 }
 0xcbf   : > { %v3407_v59 = vadd.f32 %v2933_v57, %v1946_v54  ;;  %v2876_v54 = vld [vmem:[%s3161_s2] sm:$0xff]  }
 0xcc0   : > { %v1948_v60 = vpop.f32.mrf.mxu0  ;;  %v741_v55 = vld [vmem:[%s3155_s26] sm:$0x3] }
 0xcc1   : > { %v1949_v61 = vadd.f32 %v2567_v50, %v1948_v60  ;;  %v1954_v62 = vsel %vm775_vm1, %v3407_v59, 0.0  ;;  %v2874_v50 = vld [vmem:[%s3161_s2 + $0x8] sm:$0xff]   ;;  %v2001_v57 = vrot.slane %v741_v55, %v823_v45  ;;  %v2005_v60 = vrot.slane %v741_v55, %v827_v47 }
 0xcc2   : > { %1955 = vadd.xlane.f32.xlu0 %v1954_v62  ;;  %v2788_v63 = vpop.f32.mrf.mxu0  ;;  %2672 = vmatpush3.bf16.msra.mxu0 %v2874_v50 }
 0xcc3   : > { %v3411_v1 = vadd.f32 %v2934_v0, %v1949_v61  ;;  %2673 = vmatprep.subr.bf16.mxu0 %v2875_v52 }
 0xcc5   : > { %v1957_v3 = vsel %vm775_vm1, %v3411_v1, 0.0 }
 0xcc6   : > { %1958 = vadd.xlane.f32.xlu1 %v1957_v3  ;;  %2674 = vmatpush3.bf16.msra.mxu0 %v2876_v54 }
 0xd4b   : > { %v1956_v4 = vpop.xlane.xlu0 %1955 }
 0xd4c   : > { %v1960_v6 = vmul.f32 0.015625, %v1956_v4 }
 0xd4e   : > { %v1962_v7 = vsub.f32 %v3407_v59, %v1960_v6 }
 0xd4f   : > { %v1959_v5 = vpop.xlane.xlu1 %1958 }
 0xd50   : > { %v1961_v8 = vmul.f32 0.015625, %v1959_v5  ;;  %v1964_v9 = vmul.f32 %v1962_v7, %v1962_v7 }
 0xd52   : > { %v1963_v10 = vsub.f32 %v3411_v1, %v1961_v8  ;;  %v1966_v11 = vsel %vm775_vm1, %v1964_v9, 0.0 }
 0xd53   : > { %1967 = vadd.xlane.f32.xlu0 %v1966_v11 }
 0xd54   : > { %v1965_v12 = vmul.f32 %v1963_v10, %v1963_v10 }
 0xd56   : > { %v1969_v2 = vsel %vm775_vm1, %v1965_v12, 0.0 }
 0xd57   : > { %1970 = vadd.xlane.f32.xlu0 %v1969_v2 }
 0xddc   : > { %v1968_v19 = vpop.xlane.xlu0 %1967 }
 0xddd   : > { %v1972_v21 = vmul.f32 0.015625, %v1968_v19 }
 0xddf   : > { %v1974_v58 = vadd.f32 1e-05, %v1972_v21 }
 0xde0   : > { %v1971_v22 = vpop.xlane.xlu0 %1970 }
 0xde1   : > { %2913 = vrsqrt.f32 %v1974_v58  ;;  %v1973_v23 = vmul.f32 0.015625, %v1971_v22 }
 0xde3   : > { %v1975_v24 = vadd.f32 1e-05, %v1973_v23 }
 0xde5   : > { %2915 = vrsqrt.f32 %v1975_v24 }
 0xdee   : > { %v2914_v25 = vpop.eup %2913 }
 0xdef   : > { %v1978_v26 = vmul.f32 %v2914_v25, %v1962_v7 }
 0xdf1   : > { %v1986_v29 = vmul.f32 %v2574_v27, %v1978_v26 }
 0xdf2   : > { %v2916_v56 = vpop.eup %2915 }
 0xdf3   : > { %v1979_v28 = vmul.f32 %v2916_v56, %v1963_v10  ;;  %v1994_v31 = vadd.f32 %v2575_v30, %v1986_v29  ;;  %v2589_v56 = vld [vmem:[%s697_s3] ss:$0 sm:$0xff] }
 0xdf5   : > { %v1987_v53 = vmul.f32 %v2574_v27, %v1979_v28 }
 0xdf7   : > { %v1995_v32 = vadd.f32 %v2575_v30, %v1987_v53 }
 0xdf9   : > { %v1996_v33 = vpack.c.bf16 %v1995_v32, %v1994_v31 }
 0xdfb   : > { %2584 = vmatmul.mubr.msk.bf16.vlgmr.msra.gmra.mxu1 %vm775_vm1, %v1996_v33 }
 0xebb   : > { %v2085_v61 = vpop.f32.mrf.mxu1 }
 0xebc   : > { %v2086_v62 = vadd.f32 %v2085_v61, %v2001_v57 }
 0xebd   : > { %v2087_v63 = vpop.f32.mrf.mxu1 }
 0xebe   : > { %v2585_v0 = vmul.f32 -1.702, %v2086_v62  ;;  %v2088_v3 = vadd.f32 %v2087_v63, %v2005_v60 }
 0xebf   : > { %v2089_v4 = vpop.f32.mrf.mxu1 }
 0xec0   : > { %v2102_v6 = vmul.f32 1.442695, %v2585_v0  ;;  %v2586_v7 = vmul.f32 -1.702, %v2088_v3  ;;  %v2090_v5 = vadd.f32 %v2089_v4, %v2001_v57 }
 0xec1   : > { %v2091_v8 = vpop.f32.mrf.mxu1 }
 0xec2   : > { %v2104_v9 = vmul.f32 1.442695, %v2586_v7  ;;  %v2587_v10 = vmul.f32 -1.702, %v2090_v5  ;;  %v2092_v11 = vadd.f32 %v2091_v8, %v2005_v60  ;;  %2917 = vpow2.f32 %v2102_v6 }
 0xec4   : > { %2919 = vpow2.f32 %v2104_v9  ;;  %v2106_v12 = vmul.f32 1.442695, %v2587_v10  ;;  %v2588_v45 = vmul.f32 -1.702, %v2092_v11 }
 0xec6   : > { %2921 = vpow2.f32 %v2106_v12  ;;  %v2108_v44 = vmul.f32 1.442695, %v2588_v45 }
 0xec8   : > { %2923 = vpow2.f32 %v2108_v44 }
 0xecf   : > { %v2918_v47 = vpop.eup %2917 }
 0xed0   : > { %v2110_v14 = vadd.f32 1.0, %v2918_v47 }
 0xed1   : > { %v2920_v2 = vpop.eup %2919 }
 0xed2   : > { %v2111_v13 = vadd.f32 1.0, %v2920_v2 }
 0xed3   : > { %v2922_v46 = vpop.eup %2921 }
 0xed4   : > { %v2112_v51 = vadd.f32 1.0, %v2922_v46  ;;  %2925 = vrcp.f32 %v2111_v13 }
 0xed5   : > { %v2924_v15 = vpop.eup %2923 }
 0xed6   : > { %2927 = vrcp.f32 %v2112_v51  ;;  %v2113_v16 = vadd.f32 1.0, %v2924_v15 }
 0xed7   : > { %2929 = vrcp.f32 %v2110_v14 }
 0xed8   : > { %2931 = vrcp.f32 %v2113_v16 }
 0xee1   : > { %v2926_v17 = vpop.eup %2925 }
 0xee2   : > { %v2123_v22 = vmul.f32 %v2926_v17, %v2088_v3 }
 0xee3   : > { %v2928_v18 = vpop.eup %2927 }
 0xee4   : > { %v2930_v19 = vpop.eup %2929  ;;  %v2124_v58 = vmul.f32 %v2928_v18, %v2090_v5 }
 0xee5   : > { %v2932_v21 = vpop.eup %2931  ;;  %v2122_v24 = vmul.f32 %v2930_v19, %v2086_v62 }
 0xee6   : > { %v2125_v23 = vmul.f32 %v2932_v21, %v2092_v11 }
 0xee7   : > { %v2126_v26 = vpack.c.bf16 %v2124_v58, %v2122_v24 }
 0xee8   : > { %v2127_v25 = vpack.c.bf16 %v2125_v23, %v2123_v22 }
 0xeea   : > { %2262 = vmatprep.mubr.bf16.mxu0 %v2127_v25 }
 0xeeb   : > { %2263 = vmatmul.mubr.bf16.vlgmr.msra.gmra.mxu0 %v2126_v26 }
 0xfab   : > { %v2675_v27 = vpop.f32.mrf.mxu0 }
 0xfad   : > { %v2676_v28 = vpop.f32.mrf.mxu0 }
 0xfae   : > { %v2677_v29 = vadd.f32 %v2676_v28, %v2675_v27 }
 0xfaf   : > { %v2678_v30 = vpop.f32.mrf.mxu0 }
 0xfb0   : > { %v2265_v53 = vadd.f32 %v2677_v29, %v2589_v56 }
 0xfb1   : > { %v2679_v31 = vpop.f32.mrf.mxu0 }
 0xfb2   : > { %v2271_v32 = vadd.f32 %v2265_v53, %v3407_v59  ;;  %v2680_v33 = vadd.f32 %v2679_v31, %v2678_v30  ;;  %2277 = sbr.rel (%p2606_p6) target bundleno = 4025 (0xfb9), region = 88 }
 0xfb4   : > { %v2268_v34 = vadd.f32 %v2680_v33, %v2589_v56 }
 0xfb6   : > { %v2272_v35 = vadd.f32 %v2268_v34, %v3411_v1 }
 0xfb7   : > { %2278 = vst.msk [vmem:[#allocation3] sm:$0xff] %vm775_vm1, %v2271_v32 }
 0xfb8   : > { %2279 = vst.msk [vmem:[#allocation3 + $0x8] sm:$0xff] %vm775_vm1, %v2272_v35 }
 0xfb9 PF: > { %p2607_p7 = scmp.ne.s32.totalorder %s2981_s18, 1 }
 0xfba   : > { %s3547_s2 = sld [smem:[#allocation13_spill]] (!%p2607_p7) }
 0xfbb   : > { %2282 = sbr.rel (%p2607_p7) target bundleno = 4345 (0x10f9), region = 92  ;;  %s3548_s4 = sld [smem:[#allocation14_spill]] (!%p2607_p7) }
 0xfc0   : > { %v2285_v36 = vsel %vm775_vm1, %v2271_v32, 0.0  ;;  %v2288_v59 = vsel %vm775_vm1, %v2272_v35, 0.0  ;;  %v2608_v61 = vld [vmem:[%s3547_s2] ss:$0 sm:$0xff] }
 0xfc1   : > { %2286 = vadd.xlane.f32.xlu0 %v2285_v36  ;;  %v2609_v63 = vld [vmem:[%s3548_s4] ss:$0 sm:$0xff] }
 0xfc5   : > { %2289 = vadd.xlane.f32.xlu0 %v2288_v59 }
0x104a   : > { %v2287_v37 = vpop.xlane.xlu0 %2286 }
0x104b   : > { %v2291_v20 = vmul.f32 0.015625, %v2287_v37 }
0x104d   : > { %v2293_v1 = vsub.f32 %v2271_v32, %v2291_v20 }
0x104e   : > { %v2290_v38 = vpop.xlane.xlu0 %2289 }
0x104f   : > { %v2292_v39 = vmul.f32 0.015625, %v2290_v38  ;;  %v2295_v40 = vmul.f32 %v2293_v1, %v2293_v1 }
0x1051   : > { %v2294_v41 = vsub.f32 %v2272_v35, %v2292_v39  ;;  %v2297_v43 = vsel %vm775_vm1, %v2295_v40, 0.0 }
0x1052   : > { %2298 = vadd.xlane.f32.xlu1 %v2297_v43 }
0x1053   : > { %v2296_v48 = vmul.f32 %v2294_v41, %v2294_v41 }
0x1055   : > { %v2300_v49 = vsel %vm775_vm1, %v2296_v48, 0.0 }
0x1056   : > { %2301 = vadd.xlane.f32.xlu1 %v2300_v49 }
0x10db   : > { %v2299_v42 = vpop.xlane.xlu1 %2298 }
0x10dc   : > { %v2303_v50 = vmul.f32 0.015625, %v2299_v42 }
0x10de   : > { %v2305_v52 = vadd.f32 1e-05, %v2303_v50 }
0x10df   : > { %v2302_v54 = vpop.xlane.xlu1 %2301 }
0x10e0   : > { %2935 = vrsqrt.f32 %v2305_v52  ;;  %v2304_v55 = vmul.f32 0.015625, %v2302_v54 }
0x10e2   : > { %v2306_v57 = vadd.f32 1e-05, %v2304_v55 }
0x10e4   : > { %2937 = vrsqrt.f32 %v2306_v57 }
0x10ed   : > { %v2936_v60 = vpop.eup %2935 }
0x10ee   : > { %v2309_v62 = vmul.f32 %v2936_v60, %v2293_v1 }
0x10f0   : > { %v2317_v0 = vmul.f32 %v2608_v61, %v2309_v62 }
0x10f1   : > { %v2938_v3 = vpop.eup %2937 }
0x10f2   : > { %v2325_v4 = vadd.f32 %v2609_v63, %v2317_v0  ;;  %v2310_v6 = vmul.f32 %v2938_v3, %v2294_v41 }
0x10f4   : > { %2327 = vst.msk [vmem:[#allocation3] sm:$0xff] %vm775_vm1, %v2325_v4  ;;  %v2318_v7 = vmul.f32 %v2608_v61, %v2310_v6 }
0x10f6   : > { %v2326_v5 = vadd.f32 %v2609_v63, %v2318_v7 }
0x10f8   : > { %2328 = vst.msk [vmem:[#allocation3 + $0x8] sm:$0xff] %vm775_vm1, %v2326_v5 }
0x10f9 PF: > { %s3549_s30 = sld [smem:[#allocation7_spill]]  ;;  %s3001_s21 = smov [#allocation3]  }
0x10fa   : > { %s2338_s25 = sshll.u32 %s3001_s21, 4  ;;  %s2339_s25 = int_to_ptr.vmem [resolvable:$true] %s2338_s25 }
0x10fb   : > { %s2939_s28 = scalar_lea.vmem %s2339_s25, 256  ;;  %p2946_p12 = scmp.lt.s32.totalorder %s2339_s25, %s2339_s25 }
0x10fc   : > { %p2940_p9 = scmp.ne.s32.totalorder %s2339_s25, %s2939_s28  ;;  %p2947_p13 = scmp.lt.s32.totalorder %s2939_s28, %s2939_s28 }
0x10fe   : > { %p2948_p0 = por %p2947_p13, %p2946_p12 }
0x10ff   : > { %s3550_s16 = sadd.s32 4294967295, %s3549_s30  }
0x1100   : > { %p3484_p8 = scmp.eq.s32.totalorder %s3550_s16, 1 }
0x1102   : > { %p2941_p10 = pnand %p2940_p9, %p3484_p8 }
0x1104   : > { %p2942_p11 = pneg %p2941_p10 }
0x1106   : > { %p2949_p1 = pnand %p2948_p0, %p2942_p11 }
0x1108   : > { %2952 = shalt.err (!%p2949_p1)
}
0x1109   : > { %s3002_s14 = smov 128   ;;  %s3003_s20 = smov 8  }
0x110a   : > { %s3552_s19 = sld [smem:[#allocation15_spill]] }
0x1110   : > { %2790 = dma.vmem_to_hbm [thread:$0]  (%p3484_p8), %s2339_s25, 256, %s3552_s19, [#allocation4], %s3002_s14, %s3002_s14, %s3003_s20  }
0x1111   : > { %2976 = dma.done.wait (%p3484_p8), [#allocation4], 256  }
0x1112   : > { %2978 = vsyncadd (%p3484_p8), [#allocation4], 4294967040 }
0x1113 PF: > { %s3553_s15 = sld [smem:[#allocation7_spill]] }
0x1114   : > { %s3554_s18 = sld [smem:[#allocation6_spill]] }
0x1115   : > { %s3555_s19 = sld [smem:[#allocation8_spill]] }
0x1119   : > { %s26_s20 = sadd.s32 1, %s3553_s15  }
0x111a   : > { %p23_p2 = scmp.ge.s32.totalorder %s26_s20, 4  }
0x111c   :  { %25 = sbr.rel (!%p23_p2) target bundleno = 9 (0x9), region = 156 }
0x1121   :  { %2354 = vsyncpa [#allocation4], 1 }
0x1122   :  { %2356 = vsyncpa [#allocation4 + $0x1], 1 }

</bundles_post_ra>
